<compile_context>
chip_gen: v6e
topology: v6e:2x2x1
jax: 0.10.0
libtpu: 0.0.40
codegen_flags: <defaults>
</compile_context>

<pallas_src>
import jax
import jax.numpy as jnp
from jax.experimental import pallas as pl
from jax.experimental.pallas import tpu as pltpu


def odefunc_kernel(a_ref, x_ref, w_x_ref, w_mid_ref, w_gate_ref, bias_ref, out_ref):
    f32 = jnp.float32
    n = a_ref.shape[0]                 # nodes that carry real edges (flattened rows 0..n-1)
    rows, h = out_ref.shape            # folded rows (batch_tile * num_nodes), hidden dim
    cdt = a_ref.dtype                  # MXU compute dtype (bf16); accumulation stays f32

    # 1.0 only on the grid step that owns flattened rows 0..n-1 (batch 0), else 0.0.
    gsel = (pl.program_id(0) == 0).astype(f32)

    biases = bias_ref[...]             # [8, H] packed bias rows (f32)
    b_gc1 = biases[0:1, :]
    b_gc2 = biases[1:2, :]
    b_m1 = biases[2:3, :]
    b_m2 = biases[3:4, :]
    b_g = biases[4:5, :]

    def propagate(v):
        # Flattened A_norm = blockdiag(A_small[n,n], I): real edges only touch the first
        # n rows of the block holding batch 0; every other row is a pure pass-through.
        # Entirely vreg-resident (no VMEM scratch round-trip).
        top = v[:n, :]
        prop = jnp.dot(a_ref[...], top.astype(cdt), preferred_element_type=f32)
        top = top + gsel * (prop - top)        # arithmetic select: prop on block 0, else top
        if rows == n:
            return top
        return jnp.concatenate([top, v[n:, :]], axis=0)

    x = x_ref[...]                             # [rows, H] bf16 (batch folded into M rows)

    # Fused first-stage matmul: x @ [W_gc1 | W_m1] -> one wide MXU pass.
    h12 = jnp.dot(x, w_x_ref[...], preferred_element_type=f32)       # [rows, 2H] f32
    h_g = h12[:, :h]
    h_m = h12[:, h:]

    # GCN branch (PyG GCNConv = lin -> propagate -> bias): gc2(relu(gc1(x)))
    h_g = jnp.maximum(propagate(h_g) + b_gc1, 0.0)
    h_g = jnp.dot(h_g.astype(cdt), w_mid_ref[:, :h], preferred_element_type=f32)
    hg = propagate(h_g) + b_gc2

    # Node-MLP branch: tanh(x Wm1 + bm1) Wm2 + bm2   (elementwise stays f32)
    h_m = jnp.tanh(h_m + b_m1)
    hn = jnp.dot(h_m.astype(cdt), w_mid_ref[:, h:], preferred_element_type=f32) + b_m2

    # Gate: sigmoid(hg @ Wgg + hn @ Wgn + b_g) — two K=H MXU pushes, no lane concat.
    z = (jnp.dot(hg.astype(cdt), w_gate_ref[:h, :], preferred_element_type=f32)
         + jnp.dot(hn.astype(cdt), w_gate_ref[h:, :], preferred_element_type=f32)
         + b_g)
    gate = 1.0 / (1.0 + jnp.exp(-z))           # exact sigmoid (no approx reciprocal)

    # dx = gate*hg + (1-gate)*hn, written as a single fused blend.
    out_ref[...] = hn + gate * (hg - hn)


def _pick_batch_tile(batch, num_nodes, target_rows=256):
    """Fold batches into the MXU M dimension: aim for >=256 folded rows per grid step
    (full MXU height on v6e/v7x) while keeping at least 2 grid steps so both v7x
    TensorCores get work.  Returns a divisor of `batch`."""
    if batch == 1:
        return 1
    candidates = [d for d in range(1, batch) if batch % d == 0 and batch // d >= 2]
    for d in candidates:
        if d * num_nodes >= target_rows:
            return d
    return candidates[-1]


def ode_func_forward(t, x, params, a_small, *, compute_dtype=jnp.bfloat16, batch_tile=None):
    """x: [B, N, H] -> dx/dt: [B, N, H] (f32).

    a_small is the gcn-normalized [N, N] adjacency over the N real graph nodes.  The
    PyTorch module reuses edge_index over the flattened batch, so the flattened
    adjacency is blockdiag(a_small, I); callers must guarantee edge_index.max() < N.
    """
    del t  # dynamics do not depend on t (matches the PyTorch module)
    B, N, H = x.shape
    assert H % 128 == 0, "hidden_dim must be a multiple of the 128-lane width"
    assert N % 16 == 0, "num_nodes must be a multiple of 16 (bf16 sublane tile)"

    if batch_tile is None:
        batch_tile = _pick_batch_tile(B, N)
    assert B % batch_tile == 0
    grid_len = B // batch_tile
    rows = batch_tile * N                       # folded MXU M-dimension per grid step

    f32 = jnp.float32
    cdt = compute_dtype

    # Pack weights/biases once; everything except x/out has a constant index_map
    # (resident in VMEM, fetched once — no per-step re-DMA).
    w_x = jnp.concatenate([params["w_gc1"], params["w_m1"]], axis=1).astype(cdt)    # [H, 2H]
    w_mid = jnp.concatenate([params["w_gc2"], params["w_m2"]], axis=1).astype(cdt)  # [H, 2H]
    w_gate = jnp.concatenate([params["w_gg"], params["w_gn"]], axis=0).astype(cdt)  # [2H, H]
    biases = jnp.zeros((8, H), f32)
    for i, name in enumerate(("b_gc1", "b_gc2", "b_m1", "b_m2", "b_g")):
        biases = biases.at[i].set(params[name].astype(f32))

    a = a_small.astype(cdt)
    x_flat = x.reshape(B * N, H).astype(cdt)    # fold batch (free reshape); bf16 HBM traffic

    grid_spec = pltpu.PrefetchScalarGridSpec(
        num_scalar_prefetch=0,
        grid=(grid_len,),
        in_specs=[
            pl.BlockSpec((N, N), lambda b: (0, 0)),          # A_small        (resident)
            pl.BlockSpec((rows, H), lambda b: (b, 0)),       # x  (folded batch slab)
            pl.BlockSpec((H, 2 * H), lambda b: (0, 0)),      # [W_gc1 | W_m1] (resident)
            pl.BlockSpec((H, 2 * H), lambda b: (0, 0)),      # [W_gc2 | W_m2] (resident)
            pl.BlockSpec((2 * H, H), lambda b: (0, 0)),      # [W_gg ; W_gn]  (resident)
            pl.BlockSpec((8, H), lambda b: (0, 0)),          # packed biases  (resident)
        ],
        out_specs=pl.BlockSpec((rows, H), lambda b: (b, 0)),  # lane-dense f32 stores
    )

    out_flat = pl.pallas_call(
        odefunc_kernel,
        out_shape=jax.ShapeDtypeStruct((B * N, H), f32),
        grid_spec=grid_spec,
        compiler_params=pltpu.CompilerParams(
            dimension_semantics=("parallel",),               # v7x: split grid over 2 TCs
            vmem_limit_bytes=64 * 1024 * 1024,
        ),
    )(a, x_flat, w_x, w_mid, w_gate, biases)
    return out_flat.reshape(B, N, H)


def build_gcn_norm(edge_index, edge_weight, num_nodes):
    """Dense D^{-1/2}(A + I)D^{-1/2} (PyG gcn_norm; A[dst, src] = w)."""
    src, dst = edge_index[0], edge_index[1]
    A = jnp.zeros((num_nodes, num_nodes), jnp.float32)
    A = A.at[dst, src].add(edge_weight.astype(jnp.float32))
    A = A + jnp.eye(num_nodes, dtype=jnp.float32)
    deg = jnp.sum(A, axis=1)
    dinv = jnp.where(deg > 0, 1.0 / jnp.sqrt(deg), 0.0)
    return A * dinv[:, None] * dinv[None, :]


def reference_forward_dense(x, params, edge_index, edge_weight):
    """Exact module semantics, pure f32: dense flattened [B*N, B*N] adjacency."""
    B, N, H = x.shape
    M = B * N
    a_full = build_gcn_norm(edge_index, edge_weight, M)
    xf = x.reshape(M, H).astype(jnp.float32)
    h = jnp.maximum(a_full @ (xf @ params["w_gc1"]) + params["b_gc1"], 0.0)
    hg = a_full @ (h @ params["w_gc2"]) + params["b_gc2"]
    hn = jnp.tanh(xf @ params["w_m1"] + params["b_m1"]) @ params["w_m2"] + params["b_m2"]
    gate = jax.nn.sigmoid(hg @ params["w_gg"] + hn @ params["w_gn"] + params["b_g"])
    return (gate * hg + (1.0 - gate) * hn).reshape(B, N, H)


def reference_forward(x, params, a_small, compute_dtype=jnp.float32):
    """Pure-JAX reference mirroring the kernel: block-diagonal propagation and matmul
    inputs rounded to `compute_dtype` (f32 accumulation / elementwise)."""
    B, N, H = x.shape
    f32 = jnp.float32
    a = a_small.astype(compute_dtype)
    xf = x.reshape(B * N, H).astype(compute_dtype)

    def dot(p, q):
        return jnp.dot(p.astype(compute_dtype), q.astype(compute_dtype),
                       preferred_element_type=f32)

    def propagate(v):
        prop = jnp.dot(a, v[:N].astype(compute_dtype), preferred_element_type=f32)
        return jnp.concatenate([prop, v[N:]], axis=0) if v.shape[0] > N else prop

    h = dot(xf, params["w_gc1"])
    h = jnp.maximum(propagate(h) + params["b_gc1"], 0.0)
    hg = propagate(dot(h, params["w_gc2"])) + params["b_gc2"]

    hm = jnp.tanh(dot(xf, params["w_m1"]) + params["b_m1"])
    hn = dot(hm, params["w_m2"]) + params["b_m2"]

    z = dot(hg, params["w_gg"]) + dot(hn, params["w_gn"]) + params["b_g"]
    gate = 1.0 / (1.0 + jnp.exp(-z))
    return (hn + gate * (hg - hn)).reshape(B, N, H)


if __name__ == "__main__":
    # Small but MXU-meaningful demo: 8 batches x 32 nodes x 128 hidden.
    # batch_tile=4 -> 128 folded rows per grid step, grid length 2.
    B, N, H = 8, 32, 128

    key = jax.random.PRNGKey(0)
    keys = jax.random.split(key, 16)

    # Deterministic small graph: bidirectional ring over the N "real" nodes.
    idx = jnp.arange(N, dtype=jnp.int32)
    src = jnp.concatenate([idx, (idx + 1) % N])
    dst = jnp.concatenate([(idx + 1) % N, idx])
    edge_index = jnp.stack([src, dst])                        # [2, 2N]
    edge_weight = 0.5 + jax.random.uniform(keys[0], (src.shape[0],), dtype=jnp.float32)

    # The module reuses edge_index over the flattened batch, so real edges must only
    # reference flattened nodes 0..N-1 for the block-diagonal shortcut to be exact.
    assert int(edge_index.max()) < N

    a_small = build_gcn_norm(edge_index, edge_weight, N)      # [N, N]

    def w(k, shape, scale=0.1):
        return jax.random.normal(k, shape, jnp.float32) * scale

    params = {
        "w_gc1": w(keys[1], (H, H)), "b_gc1": w(keys[2], (H,)),
        "w_gc2": w(keys[3], (H, H)), "b_gc2": w(keys[4], (H,)),
        "w_m1":  w(keys[5], (H, H)), "b_m1":  w(keys[6], (H,)),
        "w_m2":  w(keys[7], (H, H)), "b_m2":  w(keys[8], (H,)),
        "w_gg":  w(keys[9], (H, H)),      # gating weight, h_graph half of the concat
        "w_gn":  w(keys[10], (H, H)),     # gating weight, h_node half of the concat
        "b_g":   w(keys[11], (H,)),
    }

    x = jax.random.normal(keys[15], (B, N, H), jnp.float32)

    dx = ode_func_forward(0.0, x, params, a_small)
    dx = jax.block_until_ready(dx)
    assert dx.shape == (B, N, H)

    # 1) Structural check (pure JAX, f32): the block-diagonal shortcut used by the kernel
    #    equals the module's full dense flattened-graph computation.
    ref_full_f32 = reference_forward_dense(x, params, edge_index, edge_weight)
    ref_block_f32 = reference_forward(x, params, a_small, compute_dtype=jnp.float32)
    assert jnp.allclose(ref_block_f32, ref_full_f32, atol=1e-4, rtol=1e-4), \
        "block-diagonal decomposition mismatch vs dense flattened adjacency"

    # 2) Kernel check against a reference with the same mixed-precision policy
    #    (bf16 matmul inputs, f32 accumulation & elementwise) -> tight tolerance.
    ref_bf16 = reference_forward(x, params, a_small, compute_dtype=jnp.bfloat16)
    assert jnp.allclose(dx, ref_bf16, atol=2e-3, rtol=2e-3), \
        "kernel mismatch vs precision-matched pure-JAX reference"

    print("KERNEL_OK")
</pallas_src>

<mosaic_0001>
module attributes {stable_mosaic.version = 11 : i64} {
  func.func @odefunc_kernel(%arg0: i32, %arg1: memref<32x32xbf16, #tpu.memory_space<vmem>>, %arg2: memref<128x128xbf16, #tpu.memory_space<vmem>>, %arg3: memref<128x256xbf16, #tpu.memory_space<vmem>>, %arg4: memref<128x256xbf16, #tpu.memory_space<vmem>>, %arg5: memref<256x128xbf16, #tpu.memory_space<vmem>>, %arg6: memref<8x128xf32, #tpu.memory_space<vmem>>, %arg7: memref<128x128xf32, #tpu.memory_space<vmem>>) attributes {dimension_semantics = [#tpu.dimension_semantics<parallel>], iteration_bounds = array<i64: 2>, scalar_prefetch = 0 : i64, scratch_operands = 0 : i64, tpu.core_type = #tpu.core_type<tc>, window_params = [{pipeline_mode = #tpu.pipeline_mode<synchronous>, transform_indices = @transform_0, window_bounds = array<i64: 32, 32>}, {transform_indices = @transform_1, window_bounds = array<i64: 128, 128>}, {pipeline_mode = #tpu.pipeline_mode<synchronous>, transform_indices = @transform_2, window_bounds = array<i64: 128, 256>}, {pipeline_mode = #tpu.pipeline_mode<synchronous>, transform_indices = @transform_3, window_bounds = array<i64: 128, 256>}, {pipeline_mode = #tpu.pipeline_mode<synchronous>, transform_indices = @transform_4, window_bounds = array<i64: 256, 128>}, {pipeline_mode = #tpu.pipeline_mode<synchronous>, transform_indices = @transform_5, window_bounds = array<i64: 8, 128>}, {transform_indices = @transform_6, window_bounds = array<i64: 128, 128>}]} {
    %c0_i32 = arith.constant 0 : i32
    %0 = arith.cmpi eq, %arg0, %c0_i32 : i32
    %1 = arith.extui %0 : i1 to i32
    %2 = arith.sitofp %1 : i32 to f32
    %c0 = arith.constant 0 : index
    %c0_0 = arith.constant 0 : index
    %3 = vector.load %arg6[%c0, %c0_0] : memref<8x128xf32, #tpu.memory_space<vmem>>, vector<8x128xf32>
    %4 = vector.extract_strided_slice %3 {offsets = [0, 0], sizes = [1, 128], strides = [1, 1]} : vector<8x128xf32> to vector<1x128xf32>
    %5 = vector.extract_strided_slice %3 {offsets = [1, 0], sizes = [1, 128], strides = [1, 1]} : vector<8x128xf32> to vector<1x128xf32>
    %6 = vector.extract_strided_slice %3 {offsets = [2, 0], sizes = [1, 128], strides = [1, 1]} : vector<8x128xf32> to vector<1x128xf32>
    %7 = vector.extract_strided_slice %3 {offsets = [3, 0], sizes = [1, 128], strides = [1, 1]} : vector<8x128xf32> to vector<1x128xf32>
    %8 = vector.extract_strided_slice %3 {offsets = [4, 0], sizes = [1, 128], strides = [1, 1]} : vector<8x128xf32> to vector<1x128xf32>
    %c0_1 = arith.constant 0 : index
    %c0_2 = arith.constant 0 : index
    %9 = vector.load %arg2[%c0_1, %c0_2] : memref<128x128xbf16, #tpu.memory_space<vmem>>, vector<128x128xbf16>
    %c0_3 = arith.constant 0 : index
    %c0_4 = arith.constant 0 : index
    %10 = vector.load %arg3[%c0_3, %c0_4] : memref<128x256xbf16, #tpu.memory_space<vmem>>, vector<128x256xbf16>
    %cst = arith.constant dense<0.000000e+00> : vector<128x256xf32>
    %11 = tpu.matmul %9, %10, %cst {dimension_numbers = #tpu.dot_dimension_numbers<[1], [0], [0], [1], [0, 0, 1, 1], [], []>} : vector<128x128xbf16>, vector<128x256xbf16>, vector<128x256xf32> -> vector<128x256xf32>
    %12 = vector.extract_strided_slice %11 {offsets = [0, 0], sizes = [128, 128], strides = [1, 1]} : vector<128x256xf32> to vector<128x128xf32>
    %13 = vector.extract_strided_slice %11 {offsets = [0, 128], sizes = [128, 128], strides = [1, 1]} : vector<128x256xf32> to vector<128x128xf32>
    %14 = vector.extract_strided_slice %12 {offsets = [0, 0], sizes = [32, 128], strides = [1, 1]} : vector<128x128xf32> to vector<32x128xf32>
    %c0_5 = arith.constant 0 : index
    %c0_6 = arith.constant 0 : index
    %15 = vector.load %arg1[%c0_5, %c0_6] : memref<32x32xbf16, #tpu.memory_space<vmem>>, vector<32x32xbf16>
    %16 = arith.truncf %14 : vector<32x128xf32> to vector<32x128xbf16>
    %cst_7 = arith.constant dense<0.000000e+00> : vector<32x128xf32>
    %17 = tpu.matmul %15, %16, %cst_7 {dimension_numbers = #tpu.dot_dimension_numbers<[1], [0], [0], [1], [0, 0, 1, 1], [], []>} : vector<32x32xbf16>, vector<32x128xbf16>, vector<32x128xf32> -> vector<32x128xf32>
    %18 = arith.subf %17, %14 : vector<32x128xf32>
    %19 = vector.broadcast %2 : f32 to vector<32x128xf32>
    %20 = arith.mulf %19, %18 : vector<32x128xf32>
    %21 = arith.addf %14, %20 : vector<32x128xf32>
    %22 = vector.extract_strided_slice %12 {offsets = [32, 0], sizes = [96, 128], strides = [1, 1]} : vector<128x128xf32> to vector<96x128xf32>
    %23 = tpu.concatenate %21, %22 in 0 : vector<32x128xf32>, vector<96x128xf32> -> vector<128x128xf32>
    %24 = vector.broadcast %4 : vector<1x128xf32> to vector<128x128xf32>
    %25 = arith.addf %23, %24 : vector<128x128xf32>
    %cst_8 = arith.constant 0.000000e+00 : f32
    %26 = vector.broadcast %cst_8 : f32 to vector<128x128xf32>
    %27 = arith.maximumf %25, %26 : vector<128x128xf32>
    %28 = arith.truncf %27 : vector<128x128xf32> to vector<128x128xbf16>
    %c0_9 = arith.constant 0 : index
    %c0_10 = arith.constant 0 : index
    %29 = vector.load %arg4[%c0_9, %c0_10] : memref<128x256xbf16, #tpu.memory_space<vmem>>, vector<128x128xbf16>
    %cst_11 = arith.constant dense<0.000000e+00> : vector<128x128xf32>
    %30 = tpu.matmul %28, %29, %cst_11 {dimension_numbers = #tpu.dot_dimension_numbers<[1], [0], [0], [1], [0, 0, 1, 1], [], []>} : vector<128x128xbf16>, vector<128x128xbf16>, vector<128x128xf32> -> vector<128x128xf32>
    %31 = vector.extract_strided_slice %30 {offsets = [0, 0], sizes = [32, 128], strides = [1, 1]} : vector<128x128xf32> to vector<32x128xf32>
    %c0_12 = arith.constant 0 : index
    %c0_13 = arith.constant 0 : index
    %32 = vector.load %arg1[%c0_12, %c0_13] : memref<32x32xbf16, #tpu.memory_space<vmem>>, vector<32x32xbf16>
    %33 = arith.truncf %31 : vector<32x128xf32> to vector<32x128xbf16>
    %cst_14 = arith.constant dense<0.000000e+00> : vector<32x128xf32>
    %34 = tpu.matmul %32, %33, %cst_14 {dimension_numbers = #tpu.dot_dimension_numbers<[1], [0], [0], [1], [0, 0, 1, 1], [], []>} : vector<32x32xbf16>, vector<32x128xbf16>, vector<32x128xf32> -> vector<32x128xf32>
    %35 = arith.subf %34, %31 : vector<32x128xf32>
    %36 = vector.broadcast %2 : f32 to vector<32x128xf32>
    %37 = arith.mulf %36, %35 : vector<32x128xf32>
    %38 = arith.addf %31, %37 : vector<32x128xf32>
    %39 = vector.extract_strided_slice %30 {offsets = [32, 0], sizes = [96, 128], strides = [1, 1]} : vector<128x128xf32> to vector<96x128xf32>
    %40 = tpu.concatenate %38, %39 in 0 : vector<32x128xf32>, vector<96x128xf32> -> vector<128x128xf32>
    %41 = vector.broadcast %5 : vector<1x128xf32> to vector<128x128xf32>
    %42 = arith.addf %40, %41 : vector<128x128xf32>
    %43 = vector.broadcast %6 : vector<1x128xf32> to vector<128x128xf32>
    %44 = arith.addf %13, %43 : vector<128x128xf32>
    %45 = math.tanh %44 : vector<128x128xf32>
    %46 = arith.truncf %45 : vector<128x128xf32> to vector<128x128xbf16>
    %c0_15 = arith.constant 0 : index
    %c128 = arith.constant 128 : index
    %47 = vector.load %arg4[%c0_15, %c128] : memref<128x256xbf16, #tpu.memory_space<vmem>>, vector<128x128xbf16>
    %cst_16 = arith.constant dense<0.000000e+00> : vector<128x128xf32>
    %48 = tpu.matmul %46, %47, %cst_16 {dimension_numbers = #tpu.dot_dimension_numbers<[1], [0], [0], [1], [0, 0, 1, 1], [], []>} : vector<128x128xbf16>, vector<128x128xbf16>, vector<128x128xf32> -> vector<128x128xf32>
    %49 = vector.broadcast %7 : vector<1x128xf32> to vector<128x128xf32>
    %50 = arith.addf %48, %49 : vector<128x128xf32>
    %51 = arith.truncf %42 : vector<128x128xf32> to vector<128x128xbf16>
    %c0_17 = arith.constant 0 : index
    %c0_18 = arith.constant 0 : index
    %52 = vector.load %arg5[%c0_17, %c0_18] : memref<256x128xbf16, #tpu.memory_space<vmem>>, vector<128x128xbf16>
    %cst_19 = arith.constant dense<0.000000e+00> : vector<128x128xf32>
    %53 = tpu.matmul %51, %52, %cst_19 {dimension_numbers = #tpu.dot_dimension_numbers<[1], [0], [0], [1], [0, 0, 1, 1], [], []>} : vector<128x128xbf16>, vector<128x128xbf16>, vector<128x128xf32> -> vector<128x128xf32>
    %54 = arith.truncf %50 : vector<128x128xf32> to vector<128x128xbf16>
    %c128_20 = arith.constant 128 : index
    %c0_21 = arith.constant 0 : index
    %55 = vector.load %arg5[%c128_20, %c0_21] : memref<256x128xbf16, #tpu.memory_space<vmem>>, vector<128x128xbf16>
    %cst_22 = arith.constant dense<0.000000e+00> : vector<128x128xf32>
    %56 = tpu.matmul %54, %55, %cst_22 {dimension_numbers = #tpu.dot_dimension_numbers<[1], [0], [0], [1], [0, 0, 1, 1], [], []>} : vector<128x128xbf16>, vector<128x128xbf16>, vector<128x128xf32> -> vector<128x128xf32>
    %57 = arith.addf %53, %56 : vector<128x128xf32>
    %58 = vector.broadcast %8 : vector<1x128xf32> to vector<128x128xf32>
    %59 = arith.addf %57, %58 : vector<128x128xf32>
    %cst_23 = arith.constant 0.000000e+00 : f32
    %60 = vector.broadcast %cst_23 : f32 to vector<128x128xf32>
    %61 = arith.subf %60, %59 : vector<128x128xf32>
    %62 = math.exp %61 : vector<128x128xf32>
    %cst_24 = arith.constant 1.000000e+00 : f32
    %63 = vector.broadcast %cst_24 : f32 to vector<128x128xf32>
    %64 = arith.addf %63, %62 : vector<128x128xf32>
    %cst_25 = arith.constant 1.000000e+00 : f32
    %65 = vector.broadcast %cst_25 : f32 to vector<128x128xf32>
    %66 = arith.divf %65, %64 : vector<128x128xf32>
    %67 = arith.subf %42, %50 : vector<128x128xf32>
    %68 = arith.mulf %66, %67 : vector<128x128xf32>
    %69 = arith.addf %50, %68 : vector<128x128xf32>
    %c0_26 = arith.constant 0 : index
    %c0_27 = arith.constant 0 : index
    %70 = vector.load %arg7[%c0_26, %c0_27] : memref<128x128xf32, #tpu.memory_space<vmem>>, vector<128x128xf32>
    tpu.vector_store %arg7[%c0_26, %c0_27], %69 {strides = array<i32>} : memref<128x128xf32, #tpu.memory_space<vmem>>, vector<128x128xf32>,
    return
  }
  func.func @transform_0(%arg0: i32) -> (i32, i32) {
    %c0_i32 = arith.constant 0 : i32
    %c0_i32_0 = arith.constant 0 : i32
    %c0_i32_1 = arith.constant 0 : i32
    return %c0_i32, %c0_i32_0 : i32, i32
  }
  func.func @transform_1(%arg0: i32) -> (i32, i32) {
    %c0_i32 = arith.constant 0 : i32
    %c0_i32_0 = arith.constant 0 : i32
    return %arg0, %c0_i32 : i32, i32
  }
  func.func @transform_2(%arg0: i32) -> (i32, i32) {
    %c0_i32 = arith.constant 0 : i32
    %c0_i32_0 = arith.constant 0 : i32
    %c0_i32_1 = arith.constant 0 : i32
    return %c0_i32, %c0_i32_0 : i32, i32
  }
  func.func @transform_3(%arg0: i32) -> (i32, i32) {
    %c0_i32 = arith.constant 0 : i32
    %c0_i32_0 = arith.constant 0 : i32
    %c0_i32_1 = arith.constant 0 : i32
    return %c0_i32, %c0_i32_0 : i32, i32
  }
  func.func @transform_4(%arg0: i32) -> (i32, i32) {
    %c0_i32 = arith.constant 0 : i32
    %c0_i32_0 = arith.constant 0 : i32
    %c0_i32_1 = arith.constant 0 : i32
    return %c0_i32, %c0_i32_0 : i32, i32
  }
  func.func @transform_5(%arg0: i32) -> (i32, i32) {
    %c0_i32 = arith.constant 0 : i32
    %c0_i32_0 = arith.constant 0 : i32
    %c0_i32_1 = arith.constant 0 : i32
    return %c0_i32, %c0_i32_0 : i32, i32
  }
  func.func @transform_6(%arg0: i32) -> (i32, i32) {
    %c0_i32 = arith.constant 0 : i32
    %c0_i32_0 = arith.constant 0 : i32
    return %arg0, %c0_i32 : i32, i32
  }
}

</mosaic_0001>

<bundles_post_ra>
// kernel: tpu_custom_call.1
= control target key start
LH: loop header
LB: loop body
LE: loop exit
PB: predicated region body
PF: predicated region fallthrough
CT: control target
= control target key end

     0   :  { %11 = vsyncpa [#allocation3], 0  ;;  %s3362_s0 = inlined_call_operand.hbm [shape: bf16[32,32], index: 0, kind: input, shape index: {}]   ;;  %s3363_s1 = inlined_call_operand.hbm [shape: bf16[256,128], index: 1, kind: input, shape index: {}]   ;;  %s3364_s2 = inlined_call_operand.hbm [shape: bf16[128,256], index: 2, kind: input, shape index: {}]   ;;  %s3365_s3 = inlined_call_operand.hbm [shape: bf16[128,256], index: 3, kind: input, shape index: {}]   ;;  %s3366_s4 = inlined_call_operand.hbm [shape: bf16[256,128], index: 4, kind: input, shape index: {}]   ;;  %s3367_s5 = inlined_call_operand.vmem [shape: f32[8,128], index: 5, kind: input, shape index: {}]   ;;  %s3368_s6 = inlined_call_operand.hbm [shape: f32[256,128], index: 6, kind: output, shape index: {}]  }
   0x1   :  { %12 = vsyncpa [#allocation6], 0 }
   0x2   :  { %14 = vsyncpa [#allocation6 + $0x1], 0 }
   0x3   :  { %15 = vsyncpa [#allocation9], 0 }
   0x4   :  { %16 = vsyncpa [#allocation4], 0 }
   0x5   :  { %18 = vsyncpa [#allocation4 + $0x1], 0  ;;  %s2667_s21 = smov 0   ;;  %s2669_s22 = smov 0  }
   0x6   :  { %s2671_s23 = smov 0   ;;  %s2673_s24 = smov 0  }
   0x7 LB: > { %s2688_s25 = sadd.s32 4294967295, %s2617_s24   ;;  %s1835_s26 = sadd.s32 4294967294, %s2617_s24   ;;  %s2617_s24 = sphi %s2673_s24, %s3402_s24   ;;  %s2613_s23 = sphi %s2671_s23, %s3401_s23   ;;  %s2609_s22 = sphi %s2669_s22, %s3400_s22   ;;  %s2605_s21 = sphi %s2667_s21, %s3399_s21  }
   0x8   : > { %p65_p0 = scmp.ne.s32.totalorder %s2609_s22, %s2605_s21  ;;  %p3369_p1 = scmp.eq.s32.totalorder %s2688_s25, 0 }
   0x9   : > { %p179_p3 = scmp.eq.s32.totalorder %s1835_s26, 1  ;;  %p1836_p5 = scmp.ge.s32.totalorder %s2617_s24, 1 }
   0xa   : > { %p2697_p4 = por %p3369_p1, %p65_p0  ;;  %p186_p7 = scmp.lt.s32.totalorder %s2617_s24, 3 }
   0xb   : > { %p2702_p6 = por %p179_p3, %p65_p0  ;;  %s2619_s30 = smov [#allocation7]  }
   0xc   : > { %s3376_s27 = scalar_select %p2697_p4, 1, 0 }
   0xd   : > { %s3377_s28 = scalar_select %p2702_p6, 1, 0 }
   0xe   : > { %p2707_p8 = pnand %p1836_p5, %p186_p7  ;;  %s211_s7 = sshll.u32 %s2619_s30, 4  ;;  %s212_s7 = int_to_ptr.vmem [resolvable:$true] %s211_s7 }
   0xf   : > { %s2620_s9 = smov [#allocation8]   ;;  %s2621_s11 = smov [#allocation2]  }
  0x10   : > { %s3378_s29 = scalar_select %p2707_p8, 1, 0 }
  0x11   : > { %p2173_p9 = pneg %p2707_p8  ;;  %s224_s10 = sshll.u32 %s2620_s9, 4  ;;  %s225_s10 = int_to_ptr.vmem [resolvable:$true] %s224_s10 }
  0x12   : > { %s198_s12 = sshll.u32 %s2621_s11, 4  ;;  %s2420_s13 = scalar_lea.vmem %s212_s7, 2048  ;;  %s199_s12 = int_to_ptr.vmem [resolvable:$true] %s198_s12 }
  0x13   : > { %p2716_p11 = pnand %p2173_p9, %p3369_p1  ;;  %p2421_p13 = scmp.ne.s32.totalorder %s212_s7, %s2420_s13 }
  0x14   : > { %p2428_p5 = scmp.lt.s32.totalorder %s212_s7, %s212_s7  ;;  %p2429_p7 = scmp.lt.s32.totalorder %s2420_s13, %s2420_s13 }
  0x15   : > { %p2411_p12 = pneg %p2716_p11 }
  0x16   : > { %p2430_p9 = por %p2429_p7, %p2428_p5 }
  0x17   : > { %p2423_p0 = pnand %p2421_p13, %p2411_p12 }
  0x19   : > { %p2424_p3 = pneg %p2423_p0 }
  0x1b   : > { %p2431_p10 = pnand %p2430_p9, %p2424_p3 }
  0x1d   : > { %2434 = shalt.err (!%p2431_p10)
}
  0x1e   : > { %s2622_s14 = smov 128   ;;  %s2623_s15 = smov 8  }
  0x1f   : > { %2179 = dma.hbm_to_vmem [thread:$0]  (!%p2716_p11), %s3364_s2, 2048, %s212_s7, [#allocation6], %s2622_s14, %s2622_s14, %s2623_s15  }
  0x20   : > { %s2446_s18 = scalar_lea.vmem %s225_s10, 2048  ;;  %p2454_p2 = scmp.lt.s32.totalorder %s225_s10, %s225_s10 }
  0x21   : > { %p2447_p1 = scmp.ne.s32.totalorder %s225_s10, %s2446_s18  ;;  %p2455_p6 = scmp.lt.s32.totalorder %s2446_s18, %s2446_s18 }
  0x23   : > { %p2449_p13 = pnand %p2447_p1, %p2411_p12  ;;  %p2456_p5 = por %p2455_p6, %p2454_p2 }
  0x25   : > { %p2450_p0 = pneg %p2449_p13 }
  0x27   : > { %p2457_p3 = pnand %p2456_p5, %p2450_p0 }
  0x29   : > { %2460 = shalt.err (!%p2457_p3)
}
  0x2a   : > { %2182 = dma.hbm_to_vmem [thread:$0]  (!%p2716_p11), %s3365_s3, 2048, %s225_s10, [#allocation9], %s2622_s14, %s2622_s14, %s2623_s15  }
  0x2b   : > { %s2472_s26 = scalar_lea.vmem %s199_s12, 256  ;;  %p2480_p9 = scmp.lt.s32.totalorder %s199_s12, %s199_s12 }
  0x2c   : > { %p2473_p10 = scmp.ne.s32.totalorder %s199_s12, %s2472_s26  ;;  %p2481_p13 = scmp.lt.s32.totalorder %s2472_s26, %s2472_s26 }
  0x2e   : > { %p2475_p7 = pnand %p2473_p10, %p2411_p12  ;;  %p2482_p4 = por %p2481_p13, %p2480_p9 }
  0x30   : > { %p2476_p1 = pneg %p2475_p7 }
  0x32   : > { %p2483_p2 = pnand %p2482_p4, %p2476_p1 }
  0x34   : > { %2486 = shalt.err (!%p2483_p2)
}
  0x35   : > { %s3371_s30 = smov 64   ;;  %s3372_s7 = smov 4  }
  0x36   : > { %2176 = dma.hbm_to_vmem [thread:$0]  (!%p2716_p11), %s3362_s0, 256, %s199_s12, [#allocation3], %s3371_s30, %s3371_s30, %s3372_s7  }
  0x37   : > { %s2626_s11 = smov [#allocation10]  }
  0x38   : > { %s237_s13 = sshll.u32 %s2626_s11, 4  ;;  %s238_s13 = int_to_ptr.vmem [resolvable:$true] %s237_s13 }
  0x39   : > { %s2498_s14 = scalar_lea.vmem %s238_s13, 2048  ;;  %p2506_p5 = scmp.lt.s32.totalorder %s238_s13, %s238_s13 }
  0x3a   : > { %p2499_p6 = scmp.ne.s32.totalorder %s238_s13, %s2498_s14  ;;  %p2507_p3 = scmp.lt.s32.totalorder %s2498_s14, %s2498_s14 }
  0x3c   : > { %p2501_p4 = pnand %p2499_p6, %p2411_p12  ;;  %p2508_p10 = por %p2507_p3, %p2506_p5 }
  0x3e   : > { %p2502_p0 = pneg %p2501_p4 }
  0x40   : > { %p2509_p7 = pnand %p2508_p10, %p2502_p0 }
  0x42   : > { %2512 = shalt.err (!%p2509_p7)
}
  0x43   : > { %2185 = dma.hbm_to_vmem [thread:$0]  (!%p2716_p11), %s3366_s4, 2048, %s238_s13, [#allocation9], %s3371_s30, %s3371_s30, %s3372_s7  }
  0x44   : > { %s2761_s8 = sadd.s32 1, %s2617_s24   ;;  %s52_s16 = sadd.s32 1, %s2613_s23 }
  0x45   : > { %s49_s17 = ssub.s32 %s2617_s24, %s2761_s8  ;;  %p59_p12 = scmp.ne.s32.totalorder %s2613_s23, %s2609_s22 }
  0x46   : > { %p50_p1 = scmp.eq.s32.totalorder %s49_s17, 0  ;;  %p60_p9 = scmp.eq.s32.totalorder %s2617_s24, 0 }
  0x47   : > { %p3380_p13 = scmp.eq.s32.totalorder %s2688_s25, 1  ;;  %p2198_p6 = scmp.lt.s32.totalorder %s2617_s24, 2 }
  0x48   : > { %s2777_s19 = scalar_select %p50_p1, %s2613_s23, %s52_s16  }
  0x49   : > { %p2771_p2 = por %p3380_p13, %p59_p12  ;;  %p61_p4 = por %p60_p9, %p59_p12 }
  0x4a   : > { %s254_s20 = sand.u32 1, %s2617_s24   ;;  %s256_s26 = sand.u32 1, %s2613_s23  }
  0x4b   : > { %s3381_s18 = scalar_select %p2771_p2, 1, 0 }
  0x4c   : > { %s1842_s9 = sshll.u32 %s256_s26, 6  ;;  %s1919_s10 = sshll.u32 %s2617_s24, 10 }
  0x4d   : > { %s2785_s14 = scalar_lea.hbm %s3363_s1, %s1919_s10  ;;  %s258_s12 = scalar_lea.vmem [#allocation5], %s1842_s9 }
  0x4e   : > { %s265_s15 = sshll.u32 %s258_s12, 4  ;;  %p2787_p11 = pnand %p2198_p6, %p61_p4  ;;  %s2791_s15 = int_to_ptr.vmem [resolvable:$true] %s265_s15 }
  0x4f   : > { %s2793_s16 = scalar_lea.sflag [#allocation6], %s254_s20  ;;  %s2513_s26 = scalar_lea.hbm %s2785_s14, 1024 }
  0x50   : > { %p2514_p0 = scmp.ne.s32.totalorder %s2785_s14, %s2513_s26  ;;  %p2515_p5 = pneg %p2787_p11 }
  0x51   : > { %s2518_s9 = scalar_lea.hbm %s3363_s1, 2048  ;;  %p2519_p7 = scmp.lt.s32.totalorder %s2785_s14, %s3363_s1 }
  0x52   : > { %p2516_p3 = pnand %p2515_p5, %p2514_p0  ;;  %p2520_p12 = scmp.lt.s32.totalorder %s2518_s9, %s2513_s26 }
  0x54   : > { %p2517_p10 = pneg %p2516_p3  ;;  %p2521_p1 = por %p2520_p12, %p2519_p7 }
  0x56   : > { %p2522_p9 = pnand %p2521_p1, %p2517_p10 }
  0x58   : > { %2525 = shalt.err (!%p2522_p9)
}
  0x59   : > { %s2526_s20 = scalar_lea.vmem %s2791_s15, 1024  ;;  %s2627_s30 = smov [#allocation5]  }
  0x5a   : > { %p2527_p13 = scmp.ne.s32.totalorder %s2791_s15, %s2526_s20  ;;  %s2531_s7 = sshll.u32 %s2627_s30, 4  ;;  %s2532_s7 = int_to_ptr.vmem [resolvable:$false] %s2531_s7 }
  0x5b   : > { %s2533_s10 = scalar_lea.vmem %s2532_s7, 2048  ;;  %p2534_p0 = scmp.lt.s32.totalorder %s2791_s15, %s2532_s7 }
  0x5c   : > { %p2529_p6 = pnand %p2527_p13, %p2515_p5  ;;  %p2535_p3 = scmp.lt.s32.totalorder %s2533_s10, %s2526_s20 }
  0x5e   : > { %p2530_p4 = pneg %p2529_p6  ;;  %p2536_p2 = por %p2535_p3, %p2534_p0 }
  0x60   : > { %p2537_p8 = pnand %p2536_p2, %p2530_p4 }
  0x62   : > { %2540 = shalt.err (!%p2537_p8)
}
  0x63   : > { %s3383_s26 = smov 4   ;;  %s3384_s11 = smov 64  }
  0x64   : > { %2189 = dma.hbm_to_vmem [thread:$0]  (!%p2787_p11), %s2785_s14, 1024, %s2791_s15, %s2793_s16, %s3384_s11, %s3384_s11, %s3383_s26  }
  0x65   : > { %p3385_p5 = scmp.ne.s32.totalorder %s3378_s29, 0 }
  0x67   : > { %277 = sbr.rel (%p3385_p5) target bundleno = 1271 (0x4f7), region = 44 }
  0x6c   : > { %p3386_p10 = scmp.eq.s32.totalorder %s2688_s25, 0 }
  0x6e   : > { %2584 = dma.done.wait (%p3386_p10), [#allocation3], 256   ;;  %p3387_p7 = pmov %p3386_p10 }
  0x6f   : > { %s283_s30 = sand.u32 1, %s2688_s25   ;;  %s2825_s7 = sand.u32 1, %s2609_s22  }
  0x70   : > { %2586 = vsyncadd (%p3387_p7), [#allocation3], 4294967040  ;;  %s1847_s17 = sshll.u32 %s2825_s7, 6  ;;  %s284_s9 = scalar_lea.sflag [#allocation6], %s283_s30 }
  0x71   : > { %s2828_s13 = scalar_lea.vmem [#allocation5], %s1847_s17  ;;  %p3388_p8 = scmp.ne.s32.totalorder %s3376_s27, 0 }
  0x73   : > { %2588 = dma.done.wait (%p3388_p8), %s284_s9, 1024  }
  0x74   : > { %2590 = vsyncadd (%p3388_p8), %s284_s9, 4294966272  ;;  %p3389_p2 = pmov %p3387_p7 }
  0x76   : > { %2592 = dma.done.wait (%p3389_p2), [#allocation6], 2048   ;;  %p3390_p11 = pmov %p3389_p2 }
  0x77   : > { %p3391_p12 = pmov %p3389_p2 }
  0x78   : > { %2594 = vsyncadd (%p3390_p11), [#allocation6], 4294965248 }
  0x79   : > { %2596 = dma.done.wait (%p3391_p12), [#allocation9], 4096   ;;  %p3392_p1 = pmov %p3389_p2 }
  0x7a   : > { %v2628_v0 = vmov 0   ;;  %v2247_v1 = vld [vmem:[#allocation7 + $0x74] ss:$8 sps:$4 sm:$0xff]   ;;  %v2249_v2 = vld [vmem:[#allocation7 + $0x70] ss:$8 sps:$4 sm:$0xff]   ;;  %v2271_v17 = vld [vmem:[%s2828_s13] sm:$0xff]   ;;  %v693_v34 = vlaneseq }
  0x7b   : > { %2598 = vsyncadd (%p3392_p1), [#allocation9], 4294963200  ;;  %527 = vmatprep.mubr.bf16.mxu0 %v2628_v0  ;;  %495 = vmatprep.subr.bf16.mxu0 %v2247_v1  ;;  %v2250_v3 = vld [vmem:[#allocation7 + $0x64] ss:$8 sps:$4 sm:$0xff]   ;;  %v2252_v4 = vld [vmem:[#allocation7 + $0x60] ss:$8 sps:$4 sm:$0xff]   ;;  %p3393_p9 = pmov %p3392_p1 }
  0x7c   : > { %496 = vmatpush1.bf16.msra.mxu0 %v2249_v2  ;;  %v2253_v5 = vld [vmem:[#allocation7 + $0x54] ss:$8 sps:$4 sm:$0xff]   ;;  %v2255_v6 = vld [vmem:[#allocation7 + $0x50] ss:$8 sps:$4 sm:$0xff]   ;;  %v2256_v7 = vld [vmem:[#allocation7 + $0x44] ss:$8 sps:$4 sm:$0xff]  }
  0x7d   : > { %497 = vmatprep.subr.bf16.mxu0 %v2250_v3  ;;  %v2258_v8 = vld [vmem:[#allocation7 + $0x40] ss:$8 sps:$4 sm:$0xff]   ;;  %v2259_v9 = vld [vmem:[#allocation7 + $0x34] ss:$8 sps:$4 sm:$0xff]   ;;  %v2261_v10 = vld [vmem:[#allocation7 + $0x30] ss:$8 sps:$4 sm:$0xff]  }
  0x7e   : > { %v2262_v11 = vld [vmem:[#allocation7 + $0x24] ss:$8 sps:$4 sm:$0xff]   ;;  %v2264_v12 = vld [vmem:[#allocation7 + $0x20] ss:$8 sps:$4 sm:$0xff]   ;;  %v2265_v13 = vld [vmem:[#allocation7 + $0x14] ss:$8 sps:$4 sm:$0xff]  }
  0x7f   : > { %v2267_v14 = vld [vmem:[#allocation7 + $0x10] ss:$8 sps:$4 sm:$0xff]   ;;  %v2268_v15 = vld [vmem:[#allocation7 + $0x4] ss:$8 sps:$4 sm:$0xff]   ;;  %v2270_v16 = vld [vmem:[#allocation7] ss:$8 sps:$4 sm:$0xff]  }
  0x80   : > { %498 = vmatpush1.bf16.msra.mxu0 %v2252_v4  ;;  %v2272_v18 = vld [vmem:[%s2828_s13 + $0x8] sm:$0xff]   ;;  %v2273_v19 = vld [vmem:[%s2828_s13 + $0x10] sm:$0xff]   ;;  %v2274_v20 = vld [vmem:[%s2828_s13 + $0x18] sm:$0xff]   ;;  %vm624_vm0 = vcmask 261120   ;;  %v2862_v35 = vshrl.u32 %v693_v34, 7  ;;  %s1851_s16 = sshll.u32 %s2825_s7, 7 }
  0x81   : > { %499 = vmatprep.subr.bf16.mxu0 %v2253_v5  ;;  %v2275_v21 = vld [vmem:[%s2828_s13 + $0x20] sm:$0xff]   ;;  %v2276_v22 = vld [vmem:[#allocation8 + $0x74] ss:$8 sps:$4 sm:$0xff]   ;;  %v2278_v24 = vld [vmem:[%s2828_s13 + $0x28] sm:$0xff]   ;;  %s332_s14 = scalar_select %p3393_p9, 1, 0 }
  0x82   : > { %v2277_v23 = vld [vmem:[#allocation8 + $0x64] ss:$8 sps:$4 sm:$0xff]   ;;  %v2279_v25 = vld [vmem:[#allocation8 + $0x54] ss:$8 sps:$4 sm:$0xff]   ;;  %v983_v36 = vsub.s32 2, %v2862_v35  ;;  %v695_v47 = vsub.s32 0, %v2862_v35 }
  0x83   : > { %v2280_v26 = vld [vmem:[#allocation8 + $0x44] ss:$8 sps:$4 sm:$0xff]   ;;  %v2281_v27 = vld [vmem:[%s2828_s13 + $0x30] sm:$0xff]   ;;  %v2286_v31 = vld [vmem:[%s2828_s13 + $0x38] sm:$0xff]   ;;  %s333_s15 = scvt.s32.f32 %s332_s14  ;;  %s3231_s12 = scalar_lea.vmem [#allocation11], %s1851_s16 }
  0x84   : > { %500 = vmatpush1.bf16.msra.mxu0 %v2255_v6  ;;  %v2282_v28 = vld [vmem:[#allocation8 + $0x34] ss:$8 sps:$4 sm:$0xff]   ;;  %v2283_v29 = vld [vmem:[#allocation8 + $0x24] ss:$8 sps:$4 sm:$0xff]   ;;  %v2289_v57 = vld [vmem:[#allocation8 + $0x70] ss:$8 sps:$4 sm:$0xff]  }
  0x85   : > { %501 = vmatprep.subr.bf16.mxu0 %v2256_v7  ;;  %v2857_v30 = vld [vmem:[#allocation2] sm:$0xff]   ;;  %v2288_v33 = vld [vmem:[#allocation8 + $0x4] ss:$8 sps:$4 sm:$0xff]   ;;  %v2894_v59 = vld [vmem:[#allocation2 + $0x8] sm:$0xff]   ;;  %s1920_s20 = sshll.u32 %s2688_s25, 11  ;;  %s1722_s10 = sshll.u32 %s3231_s12, 4  ;;  %s3316_s10 = int_to_ptr.vmem [resolvable:$true] %s1722_s10 }
  0x86   : > { %1997 = vmatprep.mubr.msk.bf16.mxu1 %vm624_vm0, %v2857_v30  ;;  %v2287_v32 = vld [vmem:[#allocation8 + $0x14] ss:$8 sps:$4 sm:$0xff]   ;;  %s3314_s30 = scalar_lea.hbm %s3368_s6, %s1920_s20  ;;  %s1709_s25 = scalar_lea.sflag [#allocation4], %s2825_s7 }
  0x87   : > { %v2868_v37 = vld [vmem:[%s3367_s5] sm:$0xff]  ;;  %s2541_s17 = scalar_lea.vmem %s3316_s10, 2048  ;;  %p3396_p6 = scmp.ne.s32.totalorder %s3381_s18, 0 }
  0x88   : > { %502 = vmatpush1.bf16.msra.mxu0 %v2258_v8  ;;  %v2873_v39 = vrot.slane %v2868_v37, %v983_v36  ;;  %v2891_v54 = vrot.slane %v2868_v37, %v695_v47  ;;  %v2291_v8 = vld [vmem:[#allocation8 + $0x50] ss:$8 sps:$4 sm:$0xff]   ;;  %p2542_p13 = scmp.ne.s32.totalorder %s3316_s10, %s2541_s17  ;;  %s2629_s9 = smov [#allocation11]  }
  0x89   : > { %503 = vmatprep.subr.bf16.mxu0 %v2259_v9  ;;  %s2545_s13 = sshll.u32 %s2629_s9, 4  ;;  %s2546_s13 = int_to_ptr.vmem [resolvable:$false] %s2545_s13 }
  0x8a   : > { %p2543_p4 = pnand %p2542_p13, %p3396_p6  ;;  %s2547_s27 = scalar_lea.vmem %s2546_s13, 4096 }
  0x8b   : > { %p2548_p3 = scmp.lt.s32.totalorder %s3316_s10, %s2546_s13  ;;  %p2549_p5 = scmp.lt.s32.totalorder %s2547_s27, %s2541_s17 }
  0x8c   : > { %504 = vmatpush1.bf16.msra.mxu0 %v2261_v10  ;;  %p2544_p0 = pneg %p2543_p4 }
  0x8d   : > { %505 = vmatprep.subr.bf16.mxu0 %v2262_v11  ;;  %p2550_p10 = por %p2549_p5, %p2548_p3 }
  0x8f   : > { %p2551_p7 = pnand %p2550_p10, %p2544_p0 }
  0x90   : > { %506 = vmatpush1.bf16.msra.mxu0 %v2264_v12 }
  0x91   : > { %507 = vmatprep.subr.bf16.mxu0 %v2265_v13 }
  0x94   : > { %508 = vmatpush1.bf16.msra.mxu0 %v2267_v14 }
  0x95   : > { %509 = vmatprep.subr.bf16.mxu0 %v2268_v15 }
  0x98   : > { %510 = vmatpush1.bf16.msra.mxu0 %v2270_v16 }
  0x99   : > { %2041 = vmatprep.subr.bf16.mxu0 %v2276_v22 }
  0x9b   : > { %528 = vmatmul.mubr.bf16.vlgmr.msra.gmra.mxu0 %v2271_v17 }
  0x9c   : > { %537 = vmatprep.mubr.bf16.mxu0 %v2628_v0  ;;  %2042 = vmatpush3.bf16.msra.mxu0 %v2276_v22 }
  0x9d   : > { %2043 = vmatprep.subr.bf16.mxu0 %v2277_v23 }
  0xa0   : > { %2044 = vmatpush3.bf16.msra.mxu0 %v2277_v23 }
  0xa1   : > { %2045 = vmatprep.subr.bf16.mxu0 %v2279_v25 }
  0xa3   : > { %538 = vmatmul.mubr.bf16.gmra.mxu0 %v2272_v18 }
  0xa4   : > { %547 = vmatprep.mubr.bf16.mxu0 %v2628_v0  ;;  %2046 = vmatpush3.bf16.msra.mxu0 %v2279_v25 }
  0xa5   : > { %2047 = vmatprep.subr.bf16.mxu0 %v2280_v26 }
  0xa8   : > { %2048 = vmatpush3.bf16.msra.mxu0 %v2280_v26 }
  0xa9   : > { %2049 = vmatprep.subr.bf16.mxu0 %v2282_v28 }
  0xab   : > { %548 = vmatmul.mubr.bf16.gmra.mxu0 %v2273_v19 }
  0xac   : > { %557 = vmatprep.mubr.bf16.mxu0 %v2628_v0  ;;  %2050 = vmatpush3.bf16.msra.mxu0 %v2282_v28 }
  0xad   : > { %2051 = vmatprep.subr.bf16.mxu0 %v2283_v29 }
  0xb0   : > { %2052 = vmatpush3.bf16.msra.mxu0 %v2283_v29 }
  0xb1   : > { %2053 = vmatprep.subr.bf16.mxu0 %v2287_v32 }
  0xb3   : > { %558 = vmatmul.mubr.bf16.gmra.mxu0 %v2274_v20 }
  0xb4   : > { %567 = vmatprep.mubr.bf16.mxu0 %v2628_v0  ;;  %2054 = vmatpush3.bf16.msra.mxu0 %v2287_v32 }
  0xb5   : > { %2055 = vmatprep.subr.bf16.mxu0 %v2288_v33 }
  0xb8   : > { %2056 = vmatpush3.bf16.msra.mxu0 %v2288_v33 }
  0xbb   : > { %568 = vmatmul.mubr.bf16.gmra.mxu0 %v2275_v21 }
  0xbc   : > { %577 = vmatprep.mubr.bf16.mxu0 %v2628_v0 }
  0xc3   : > { %578 = vmatmul.mubr.bf16.gmra.mxu0 %v2278_v24 }
  0xc4   : > { %587 = vmatprep.mubr.bf16.mxu0 %v2628_v0 }
  0xcb   : > { %588 = vmatmul.mubr.bf16.gmra.mxu0 %v2281_v27 }
  0xcc   : > { %597 = vmatprep.mubr.bf16.mxu0 %v2628_v0  ;;  %v2290_v0 = vld [vmem:[#allocation8 + $0x60] ss:$8 sps:$4 sm:$0xff]  }
  0xd3   : > { %598 = vmatmul.mubr.bf16.gmra.mxu0 %v2286_v31 }
 0x15b   : > { %v2870_v38 = vpop.f32.mrf.mxu0 }
 0x15d   : > { %v531_v40 = vpop.f32.mrf.mxu0 }
 0x15e   : > { %v985_v41 = vadd.f32 %v2873_v39, %v531_v40 }
 0x15f   : > { %v2876_v42 = vpop.f32.mrf.mxu0 }
 0x160   : > { %2313 = vtanh.f32 %v985_v41  ;;  %v612_v52 = vpack.c.bf16 %v2876_v42, %v2870_v38 }
 0x161   : > { %v535_v43 = vpop.f32.mrf.mxu0 }
 0x162   : > { %v986_v44 = vadd.f32 %v2873_v39, %v535_v43 }
 0x163   : > { %v2879_v45 = vpop.f32.mrf.mxu0 }
 0x164   : > { %2315 = vtanh.f32 %v986_v44 }
 0x165   : > { %v541_v46 = vpop.f32.mrf.mxu0 }
 0x166   : > { %v987_v48 = vadd.f32 %v2873_v39, %v541_v46 }
 0x167   : > { %v2883_v49 = vpop.f32.mrf.mxu0 }
 0x168   : > { %v613_v50 = vpack.c.bf16 %v2883_v49, %v2879_v45  ;;  %2317 = vtanh.f32 %v987_v48 }
 0x169   : > { %v545_v51 = vpop.f32.mrf.mxu0 }
 0x16a   : > { %v988_v53 = vadd.f32 %v2873_v39, %v545_v51  ;;  %1993 = vmatprep.subr.bf16.mxu1 %v613_v50 }
 0x16b   : > { %1994 = vmatpush3.bf16.msra.mxu1 %v613_v50  ;;  %v549_v55 = vpop.f32.mrf.mxu0 }
 0x16c   : > { %2319 = vtanh.f32 %v988_v53  ;;  %1995 = vmatprep.subr.bf16.mxu1 %v612_v52  ;;  %v701_v56 = vadd.f32 %v2891_v54, %v549_v55  ;;  %v2292_v55 = vld [vmem:[#allocation8 + $0x40] ss:$8 sps:$4 sm:$0xff]  }
 0x16d   : > { %v551_v58 = vpop.f32.mrf.mxu0  ;;  %v2314_v61 = vpop.eup %2313 }
 0x16e   : > { %v717_v62 = vmax.f32 %v701_v56, 0.0  ;;  %v989_v47 = vadd.f32 %v2873_v39, %v551_v58 }
 0x16f   : > { %1996 = vmatpush3.bf16.msra.mxu1 %v612_v52  ;;  %v553_v60 = vpop.f32.mrf.mxu0 }
 0x170   : > { %v702_v63 = vadd.f32 %v2891_v54, %v553_v60  ;;  %2001 = vmatprep.subr.bf16.mxu1 %v2289_v57  ;;  %2321 = vtanh.f32 %v989_v47 }
 0x171   : > { %v2316_v1 = vpop.eup %2315  ;;  %v555_v2 = vpop.f32.mrf.mxu0 }
 0x172   : > { %1998 = vmatmul.mubr.msk.bf16.vlgmr.msra.gmra.mxu1 %vm624_vm0, %v2894_v59  ;;  %v1017_v3 = vpack.c.bf16 %v2316_v1, %v2314_v61  ;;  %v718_v4 = vmax.f32 %v702_v63, 0.0  ;;  %v990_v48 = vadd.f32 %v2873_v39, %v555_v2  ;;  %v2293_v63 = vld [vmem:[#allocation8 + $0x30] ss:$8 sps:$4 sm:$0xff]   ;;  %v2294_v2 = vld [vmem:[#allocation8 + $0x20] ss:$8 sps:$4 sm:$0xff]  }
 0x173   : > { %v559_v5 = vpop.f32.mrf.mxu0  ;;  %2002 = vmatpush3.bf16.msra.mxu1 %v2289_v57 }
 0x174   : > { %2057 = vmatprep.mubr.bf16.mxu0 %v1017_v3  ;;  %v2899_v6 = vpack.c.bf16 %v718_v4, %v717_v62  ;;  %v703_v7 = vadd.f32 %v2891_v54, %v559_v5  ;;  %2003 = vmatprep.subr.bf16.mxu1 %v2290_v0  ;;  %2323 = vtanh.f32 %v990_v48  ;;  %v2934_v48 = vstv %s333_s15 }
 0x175   : > { %v561_v9 = vpop.f32.mrf.mxu0  ;;  %v2318_v11 = vpop.eup %2317 }
 0x176   : > { %v719_v12 = vmax.f32 %v703_v7, 0.0  ;;  %v991_v51 = vadd.f32 %v2873_v39, %v561_v9  ;;  %v2295_v9 = vld [vmem:[#allocation8 + $0x10] ss:$8 sps:$4 sm:$0xff]  }
 0x177   : > { %v563_v10 = vpop.f32.mrf.mxu0  ;;  %2004 = vmatpush3.bf16.msra.mxu1 %v2290_v0 }
 0x178   : > { %v704_v13 = vadd.f32 %v2891_v54, %v563_v10  ;;  %2005 = vmatprep.subr.bf16.mxu1 %v2291_v8  ;;  %2325 = vtanh.f32 %v991_v51 }
 0x179   : > { %v2320_v14 = vpop.eup %2319  ;;  %v565_v18 = vpop.f32.mrf.mxu0 }
 0x17a   : > { %v1018_v15 = vpack.c.bf16 %v2320_v14, %v2318_v11  ;;  %v720_v16 = vmax.f32 %v704_v13, 0.0  ;;  %v992_v56 = vadd.f32 %v2873_v39, %v565_v18 }
 0x17b   : > { %2006 = vmatpush3.bf16.msra.mxu1 %v2291_v8  ;;  %v569_v19 = vpop.f32.mrf.mxu0 }
 0x17c   : > { %2058 = vmatmul.mubr.bf16.vlgmr.msra.gmra.mxu0 %v1018_v15  ;;  %v2903_v17 = vpack.c.bf16 %v720_v16, %v719_v12  ;;  %v705_v20 = vadd.f32 %v2891_v54, %v569_v19  ;;  %2007 = vmatprep.subr.bf16.mxu1 %v2292_v55  ;;  %2327 = vtanh.f32 %v992_v56  ;;  %v2296_v15 = vld [vmem:[#allocation8] ss:$8 sps:$4 sm:$0xff]  }
 0x17d   : > { %v571_v21 = vpop.f32.mrf.mxu0  ;;  %v2322_v11 = vpop.eup %2321 }
 0x17e   : > { %v721_v23 = vmax.f32 %v705_v20, 0.0  ;;  %v993_v60 = vadd.f32 %v2873_v39, %v571_v21 }
 0x17f   : > { %v573_v22 = vpop.f32.mrf.mxu0  ;;  %2008 = vmatpush3.bf16.msra.mxu1 %v2292_v55 }
 0x180   : > { %v706_v24 = vadd.f32 %v2891_v54, %v573_v22  ;;  %2329 = vtanh.f32 %v993_v60  ;;  %2009 = vmatprep.subr.bf16.mxu1 %v2293_v63 }
 0x181   : > { %v575_v25 = vpop.f32.mrf.mxu0  ;;  %v2324_v14 = vpop.eup %2323 }
 0x182   : > { %v722_v26 = vmax.f32 %v706_v24, 0.0  ;;  %v994_v58 = vadd.f32 %v2873_v39, %v575_v25 }
 0x183   : > { %v579_v27 = vpop.f32.mrf.mxu0  ;;  %2010 = vmatpush3.bf16.msra.mxu1 %v2293_v63 }
 0x184   : > { %v2907_v28 = vpack.c.bf16 %v722_v26, %v721_v23  ;;  %v707_v29 = vadd.f32 %v2891_v54, %v579_v27  ;;  %2331 = vtanh.f32 %v994_v58  ;;  %2011 = vmatprep.subr.bf16.mxu1 %v2294_v2  ;;  %v1019_v26 = vpack.c.bf16 %v2324_v14, %v2322_v11 }
 0x185   : > { %v581_v31 = vpop.f32.mrf.mxu0  ;;  %v2326_v16 = vpop.eup %2325 }
 0x186   : > { %v723_v33 = vmax.f32 %v707_v29, 0.0  ;;  %v995_v1 = vadd.f32 %v2873_v39, %v581_v31  ;;  %2061 = vmatprep.mubr.bf16.mxu0 %v1019_v26  ;;  %v2297_v26 = vld [vmem:[#allocation10 + $0x78] sm:$0xff]  }
 0x187   : > { %v583_v32 = vpop.f32.mrf.mxu0  ;;  %2012 = vmatpush3.bf16.msra.mxu1 %v2294_v2 }
 0x188   : > { %v708_v34 = vadd.f32 %v2891_v54, %v583_v32  ;;  %2333 = vtanh.f32 %v995_v1  ;;  %2013 = vmatprep.subr.bf16.mxu1 %v2295_v9 }
 0x189   : > { %v585_v36 = vpop.f32.mrf.mxu0  ;;  %v2328_v21 = vpop.eup %2327 }
 0x18a   : > { %v724_v40 = vmax.f32 %v708_v34, 0.0  ;;  %v996_v3 = vadd.f32 %v2873_v39, %v585_v36  ;;  %v1020_v27 = vpack.c.bf16 %v2328_v21, %v2326_v16  ;;  %v1043_v16 = vsub.s32 3, %v2862_v35 }
 0x18b   : > { %v589_v41 = vpop.f32.mrf.mxu0  ;;  %2014 = vmatpush3.bf16.msra.mxu1 %v2295_v9 }
 0x18c   : > { %v2911_v43 = vpack.c.bf16 %v724_v40, %v723_v33  ;;  %v709_v44 = vadd.f32 %v2891_v54, %v589_v41  ;;  %2335 = vtanh.f32 %v996_v3  ;;  %2015 = vmatprep.subr.bf16.mxu1 %v2296_v15  ;;  %2062 = vmatmul.mubr.bf16.gmra.mxu0 %v1020_v27 }
 0x18d   : > { %v591_v46 = vpop.f32.mrf.mxu0  ;;  %v2330_v23 = vpop.eup %2329 }
 0x18e   : > { %v725_v52 = vmax.f32 %v709_v44, 0.0  ;;  %v997_v5 = vadd.f32 %v2873_v39, %v591_v46 }
 0x18f   : > { %v593_v50 = vpop.f32.mrf.mxu0  ;;  %2016 = vmatpush3.bf16.msra.mxu1 %v2296_v15 }
 0x190   : > { %v710_v53 = vadd.f32 %v2891_v54, %v593_v50  ;;  %2337 = vtanh.f32 %v997_v5 }
 0x191   : > { %v595_v57 = vpop.f32.mrf.mxu0  ;;  %v2332_v25 = vpop.eup %2331 }
 0x192   : > { %v726_v61 = vmax.f32 %v710_v53, 0.0  ;;  %v998_v7 = vadd.f32 %v2873_v39, %v595_v57  ;;  %v1021_v29 = vpack.c.bf16 %v2332_v25, %v2330_v23 }
 0x193   : > { %v599_v0 = vpop.f32.mrf.mxu0 }
 0x194   : > { %v2921_v62 = vpack.c.bf16 %v726_v61, %v725_v52  ;;  %v711_v8 = vadd.f32 %v2891_v54, %v599_v0  ;;  %2339 = vtanh.f32 %v998_v7  ;;  %2065 = vmatprep.mubr.bf16.mxu0 %v1021_v29 }
 0x195   : > { %v601_v4 = vpop.f32.mrf.mxu0  ;;  %v2334_v31 = vpop.eup %2333 }
 0x196   : > { %v727_v12 = vmax.f32 %v711_v8, 0.0  ;;  %v999_v18 = vadd.f32 %v2873_v39, %v601_v4 }
 0x197   : > { %v603_v10 = vpop.f32.mrf.mxu0 }
 0x198   : > { %v712_v13 = vadd.f32 %v2891_v54, %v603_v10  ;;  %2341 = vtanh.f32 %v999_v18 }
 0x199   : > { %v605_v20 = vpop.f32.mrf.mxu0  ;;  %v2336_v32 = vpop.eup %2335 }
 0x19a   : > { %v728_v19 = vmax.f32 %v712_v13, 0.0  ;;  %v1000_v22 = vadd.f32 %v2873_v39, %v605_v20  ;;  %v1022_v36 = vpack.c.bf16 %v2336_v32, %v2334_v31  ;;  %v963_v20 = vsub.s32 1, %v2862_v35 }
 0x19c   : > { %v736_v24 = vpack.c.bf16 %v728_v19, %v727_v12  ;;  %2343 = vtanh.f32 %v1000_v22  ;;  %2066 = vmatmul.mubr.bf16.gmra.mxu0 %v1022_v36  ;;  %v3014_v29 = vrot.slane %v2868_v37, %v963_v20 }
 0x19d   : > { %v2338_v33 = vpop.eup %2337 }
 0x1a1   : > { %v2340_v34 = vpop.eup %2339 }
 0x1a2   : > { %v1023_v39 = vpack.c.bf16 %v2340_v34, %v2338_v33 }
 0x1a4   : > { %2069 = vmatprep.mubr.bf16.mxu0 %v1023_v39  ;;  %v2298_v39 = vld [vmem:[#allocation10 + $0x70] sm:$0xff]  }
 0x1a5   : > { %v2342_v40 = vpop.eup %2341 }
 0x1a9   : > { %v2344_v41 = vpop.eup %2343 }
 0x1aa   : > { %v1024_v44 = vpack.c.bf16 %v2344_v41, %v2342_v40 }
 0x1ac   : > { %2070 = vmatmul.mubr.bf16.gmra.mxu0 %v1024_v44 }
 0x232   : > { %v1999_v46 = vpop.f32.mrf.mxu1 }
 0x233   : > { %v682_v47 = vsub.f32 %v1999_v46, %v2879_v45 }
 0x234   : > { %v665_v50 = vpop.f32.mrf.mxu1 }
 0x235   : > { %v680_v51 = vsub.f32 %v665_v50, %v2870_v38  ;;  %v687_v52 = vmul.f32 %v2934_v48, %v682_v47 }
 0x236   : > { %v2000_v53 = vpop.f32.mrf.mxu1 }
 0x237   : > { %v685_v55 = vmul.f32 %v2934_v48, %v680_v51  ;;  %v683_v56 = vsub.f32 %v2000_v53, %v2883_v49  ;;  %v691_v63 = vadd.f32 %v687_v52, %v2879_v45  ;;  %v2299_v53 = vld [vmem:[#allocation10 + $0x68] sm:$0xff]  }
 0x238   : > { %v668_v57 = vpop.f32.mrf.mxu1 }
 0x239   : > { %v689_v60 = vadd.f32 %v685_v55, %v2870_v38  ;;  %v688_v61 = vmul.f32 %v2934_v48, %v683_v56  ;;  %v681_v58 = vsub.f32 %v668_v57, %v2876_v42  ;;  %v699_v5 = vadd.f32 %v2891_v54, %v691_v63 }
 0x23b   : > { %v692_v0 = vadd.f32 %v688_v61, %v2883_v49  ;;  %v686_v1 = vmul.f32 %v2934_v48, %v681_v58  ;;  %v697_v4 = vadd.f32 %v2891_v54, %v689_v60  ;;  %v715_v10 = vmax.f32 %v699_v5, 0.0  ;;  %v2961_v49 = vld [vmem:[#allocation10 + $0x30] sm:$0xff]   ;;  %v2300_v61 = vld [vmem:[#allocation10 + $0x60] sm:$0xff]  }
 0x23d   : > { %v700_v2 = vadd.f32 %v2891_v54, %v692_v0  ;;  %v690_v3 = vadd.f32 %v686_v1, %v2876_v42  ;;  %v713_v8 = vmax.f32 %v697_v4, 0.0  ;;  %v2958_v42 = vld [vmem:[#allocation10 + $0x38] sm:$0xff]  }
 0x23e   : > { %2105 = vmatprep.subr.bf16.mxu0 %v2958_v42  ;;  %v2301_v4 = vld [vmem:[#allocation10 + $0x58] sm:$0xff]  }
 0x23f   : > { %v698_v38 = vadd.f32 %v2891_v54, %v690_v3  ;;  %v716_v7 = vmax.f32 %v700_v2, 0.0  ;;  %2106 = vmatpush3.bf16.msra.mxu0 %v2958_v42  ;;  %v2966_v54 = vld [vmem:[#allocation10 + $0x28] sm:$0xff]  }
 0x240   : > { %2107 = vmatprep.subr.bf16.mxu0 %v2961_v49 }
 0x241   : > { %v714_v9 = vmax.f32 %v698_v38, 0.0  ;;  %v730_v45 = vpack.c.bf16 %v716_v7, %v715_v10  ;;  %v2302_v7 = vld [vmem:[#allocation10 + $0x50] sm:$0xff]  }
 0x243   : > { %v729_v11 = vpack.c.bf16 %v714_v9, %v713_v8  ;;  %2108 = vmatpush3.bf16.msra.mxu0 %v2961_v49  ;;  %v2303_v9 = vld [vmem:[#allocation10 + $0x48] sm:$0xff]  }
 0x244   : > { %2109 = vmatprep.subr.bf16.mxu0 %v2966_v54 }
 0x245   : > { %2017 = vmatprep.mubr.bf16.mxu1 %v729_v11  ;;  %v2304_v11 = vld [vmem:[#allocation10 + $0x40] sm:$0xff]  }
 0x246   : > { %2018 = vmatmul.mubr.bf16.vlgmr.msra.gmra.mxu1 %v730_v45 }
 0x247   : > { %2021 = vmatprep.mubr.bf16.mxu1 %v2899_v6  ;;  %v2969_v6 = vld [vmem:[#allocation10 + $0x20] sm:$0xff]   ;;  %2110 = vmatpush3.bf16.msra.mxu0 %v2966_v54 }
 0x248   : > { %2111 = vmatprep.subr.bf16.mxu0 %v2969_v6 }
 0x24b   : > { %2112 = vmatpush3.bf16.msra.mxu0 %v2969_v6 }
 0x24e   : > { %2022 = vmatmul.mubr.bf16.gmra.mxu1 %v2903_v17  ;;  %v2977_v17 = vld [vmem:[#allocation10 + $0x10] sm:$0xff]  }
 0x24f   : > { %2025 = vmatprep.mubr.bf16.mxu1 %v2907_v28  ;;  %v2982_v28 = vld [vmem:[#allocation10 + $0x8] sm:$0xff]  }
 0x256   : > { %2026 = vmatmul.mubr.bf16.gmra.mxu1 %v2911_v43  ;;  %v2985_v43 = vld [vmem:[#allocation10] sm:$0xff]  }
 0x257   : > { %2029 = vmatprep.mubr.bf16.mxu1 %v2921_v62  ;;  %v2990_v62 = vpop.f32.mrf.mxu0 }
 0x259   : > { %v1127_v12 = vpop.f32.mrf.mxu0 }
 0x25b   : > { %v2996_v15 = vpop.f32.mrf.mxu0 }
 0x25d   : > { %v1130_v22 = vpop.f32.mrf.mxu0 }
 0x25e   : > { %2030 = vmatmul.mubr.bf16.gmra.mxu1 %v736_v24  ;;  %v3009_v24 = vrot.slane %v2868_v37, %v1043_v16 }
 0x25f   : > { %2037 = vmatprep.mubr.msk.bf16.mxu1 %vm624_vm0, %v2857_v30  ;;  %v2974_v30 = vld [vmem:[#allocation10 + $0x18] sm:$0xff]   ;;  %v3011_v27 = vpop.f32.mrf.mxu0 }
 0x260   : > { %2113 = vmatprep.subr.bf16.mxu0 %v2974_v30  ;;  %v3017_v31 = vadd.f32 %v1130_v22, %v3009_v24  ;;  %v3023_v34 = vadd.f32 %v1127_v12, %v3009_v24  ;;  %v3070_v22 = vadd.f32 %v2990_v62, %v3009_v24 }
 0x261   : > { %2114 = vmatpush3.bf16.msra.mxu0 %v2974_v30  ;;  %v1143_v40 = vpop.f32.mrf.mxu0 }
 0x262   : > { %2115 = vmatprep.subr.bf16.mxu0 %v2977_v17  ;;  %v1214_v46 = vpack.c.bf16 %v3017_v31, %v3023_v34  ;;  %v3059_v12 = vadd.f32 %v1143_v40, %v3009_v24 }
 0x263   : > { %v2064_v55 = vpop.f32.mrf.mxu0 }
 0x265   : > { %2116 = vmatpush3.bf16.msra.mxu0 %v2977_v17  ;;  %v1146_v58 = vpop.f32.mrf.mxu0 }
 0x266   : > { %2117 = vmatprep.subr.bf16.mxu0 %v2982_v28  ;;  %v3062_v16 = vadd.f32 %v1146_v58, %v3009_v24 }
 0x267   : > { %v2067_v5 = vpop.f32.mrf.mxu0 }
 0x269   : > { %2118 = vmatpush3.bf16.msra.mxu0 %v2982_v28  ;;  %v1159_v8 = vpop.f32.mrf.mxu0 }
 0x26a   : > { %2119 = vmatprep.subr.bf16.mxu0 %v2985_v43  ;;  %v3086_v62 = vadd.f32 %v1159_v8, %v3009_v24 }
 0x26b   : > { %v2068_v10 = vpop.f32.mrf.mxu0 }
 0x26d   : > { %2120 = vmatpush3.bf16.msra.mxu0 %v2985_v43  ;;  %v1162_v45 = vpop.f32.mrf.mxu0 }
 0x26f   : > { %v2071_v20 = vpop.f32.mrf.mxu0 }
 0x270   : > { %v3119_v58 = vadd.f32 %v2071_v20, %v3009_v24 }
 0x306   : > { %v2992_v13 = vpop.f32.mrf.mxu1 }
 0x308   : > { %v2994_v14 = vpop.f32.mrf.mxu1 }
 0x30a   : > { %v2999_v18 = vpop.f32.mrf.mxu1 }
 0x30b   : > { %v899_v19 = vpack.c.bf16 %v2999_v18, %v2992_v13 }
 0x30c   : > { %v3004_v21 = vpop.f32.mrf.mxu1 }
 0x30d   : > { %v898_v23 = vpack.c.bf16 %v3004_v21, %v2994_v14  ;;  %2033 = vmatprep.subr.bf16.mxu1 %v899_v19 }
 0x30e   : > { %2034 = vmatpush3.bf16.msra.mxu1 %v899_v19  ;;  %v2023_v25 = vpop.f32.mrf.mxu1  ;;  %v3066_v19 = vadd.f32 %v2996_v15, %v3009_v24  ;;  %v3079_v15 = vadd.f32 %v3011_v27, %v3009_v24 }
 0x30f   : > { %2035 = vmatprep.subr.bf16.mxu1 %v898_v23  ;;  %v3020_v33 = vadd.f32 %v2023_v25, %v3014_v29 }
 0x310   : > { %v851_v32 = vpop.f32.mrf.mxu1  ;;  %v1215_v25 = vpack.c.bf16 %v3066_v19, %v3070_v22 }
 0x311   : > { %v3026_v41 = vadd.f32 %v3014_v29, %v851_v32  ;;  %v3082_v32 = vadd.f32 %v2064_v55, %v3009_v24 }
 0x312   : > { %2036 = vmatpush3.bf16.msra.mxu1 %v898_v23  ;;  %v2024_v36 = vpop.f32.mrf.mxu1  ;;  %v1216_v23 = vpack.c.bf16 %v3062_v16, %v3059_v12 }
 0x313   : > { %2073 = vmatprep.subr.bf16.mxu1 %v2297_v26  ;;  %v3029_v44 = vadd.f32 %v2024_v36, %v3014_v29  ;;  %v3089_v36 = vadd.f32 %v1162_v45, %v3009_v24  ;;  %v1217_v27 = vpack.c.bf16 %v3082_v32, %v3079_v15 }
 0x314   : > { %v854_v47 = vpop.f32.mrf.mxu1 }
 0x315   : > { %2038 = vmatmul.mubr.msk.bf16.vlgmr.msra.gmra.mxu1 %vm624_vm0, %v2894_v59  ;;  %v1193_v50 = vpack.c.bf16 %v3029_v44, %v3020_v33  ;;  %v3038_v51 = vadd.f32 %v3014_v29, %v854_v47 }
 0x316   : > { %2074 = vmatpush3.bf16.msra.mxu1 %v2297_v26  ;;  %2089 = vmatprep.mubr.bf16.mxu1 %v1214_v46  ;;  %v2027_v52 = vpop.f32.mrf.mxu1  ;;  %v1175_v26 = vpop.f32.mrf.mxu0  ;;  %v1218_v46 = vpack.c.bf16 %v3089_v36, %v3086_v62 }
 0x317   : > { %2075 = vmatprep.subr.bf16.mxu1 %v2298_v39  ;;  %v1192_v56 = vpack.c.bf16 %v3038_v51, %v3026_v41  ;;  %v3043_v60 = vadd.f32 %v2027_v52, %v3014_v29  ;;  %v3099_v52 = vadd.f32 %v2067_v5, %v3009_v24  ;;  %v3106_v55 = vadd.f32 %v1175_v26, %v3009_v24 }
 0x318   : > { %v867_v57 = vpop.f32.mrf.mxu1 }
 0x319   : > { %v3046_v63 = vadd.f32 %v3014_v29, %v867_v57 }
 0x31a   : > { %2076 = vmatpush3.bf16.msra.mxu1 %v2298_v39  ;;  %v2028_v59 = vpop.f32.mrf.mxu1  ;;  %v2072_v39 = vpop.f32.mrf.mxu0 }
 0x31b   : > { %2077 = vmatprep.subr.bf16.mxu1 %v2299_v53  ;;  %v3049_v0 = vadd.f32 %v2028_v59, %v3014_v29 }
 0x31c   : > { %v870_v1 = vpop.f32.mrf.mxu1 }
 0x31d   : > { %v1195_v2 = vpack.c.bf16 %v3049_v0, %v3043_v60  ;;  %v3054_v3 = vadd.f32 %v3014_v29, %v870_v1  ;;  %v3122_v1 = vadd.f32 %v2072_v39, %v3009_v24 }
 0x31e   : > { %2078 = vmatpush3.bf16.msra.mxu1 %v2299_v53  ;;  %v2031_v40 = vpop.f32.mrf.mxu1  ;;  %v3102_v53 = vadd.f32 %v2068_v10, %v3009_v24 }
 0x31f   : > { %3394 = vst [vmem:[#allocation17_spill] sm:$0xff] %v3054_v3  ;;  %2079 = vmatprep.subr.bf16.mxu1 %v2300_v61  ;;  %v1194_v38 = vpack.c.bf16 %v3054_v3, %v3046_v63  ;;  %v1221_v5 = vpack.c.bf16 %v3122_v1, %v3119_v58 }
 0x320   : > { %v883_v47 = vpop.f32.mrf.mxu1  ;;  %v1219_v59 = vpack.c.bf16 %v3102_v53, %v3099_v52 }
 0x322   : > { %2080 = vmatpush3.bf16.msra.mxu1 %v2300_v61  ;;  %v2032_v57 = vpop.f32.mrf.mxu1 }
 0x323   : > { %2081 = vmatprep.subr.bf16.mxu1 %v2301_v4 }
 0x326   : > { %2082 = vmatpush3.bf16.msra.mxu1 %v2301_v4  ;;  %v3126_v4 = vadd.f32 %v3014_v29, %v883_v47 }
 0x327   : > { %2083 = vmatprep.subr.bf16.mxu1 %v2302_v7 }
 0x32a   : > { %2084 = vmatpush3.bf16.msra.mxu1 %v2302_v7  ;;  %v3142_v7 = vadd.f32 %v2032_v57, %v3014_v29 }
 0x32b   : > { %2085 = vmatprep.subr.bf16.mxu1 %v2303_v9 }
 0x32e   : > { %2086 = vmatpush3.bf16.msra.mxu1 %v2303_v9 }
 0x32f   : > { %2087 = vmatprep.subr.bf16.mxu1 %v2304_v11 }
 0x332   : > { %2088 = vmatpush3.bf16.msra.mxu1 %v2304_v11 }
 0x333   : > { %2137 = vmatprep.subr.bf16.mxu1 %v2958_v42 }
 0x335   : > { %2090 = vmatmul.mubr.bf16.vlgmr.msra.gmra.mxu1 %v1215_v25 }
 0x336   : > { %2145 = vmatpush3.bf16.msra.mxu1 %v2958_v42  ;;  %2093 = vmatprep.mubr.bf16.mxu1 %v1216_v23  ;;  %v1178_v42 = vpop.f32.mrf.mxu0 }
 0x337   : > { %2138 = vmatprep.subr.bf16.mxu1 %v2961_v49 }
 0x33a   : > { %2146 = vmatpush3.bf16.msra.mxu1 %v2961_v49  ;;  %v3109_v49 = vadd.f32 %v1178_v42, %v3009_v24 }
 0x33b   : > { %2139 = vmatprep.subr.bf16.mxu1 %v2966_v54 }
 0x33c   : > { %v1220_v61 = vpack.c.bf16 %v3109_v49, %v3106_v55 }
 0x33d   : > { %2094 = vmatmul.mubr.bf16.gmra.mxu1 %v1217_v27 }
 0x33e   : > { %2147 = vmatpush3.bf16.msra.mxu1 %v2966_v54  ;;  %2097 = vmatprep.mubr.bf16.mxu1 %v1218_v46  ;;  %v886_v54 = vpop.f32.mrf.mxu1 }
 0x33f   : > { %2140 = vmatprep.subr.bf16.mxu1 %v2969_v6 }
 0x342   : > { %2148 = vmatpush3.bf16.msra.mxu1 %v2969_v6  ;;  %v3129_v6 = vadd.f32 %v3014_v29, %v886_v54 }
 0x343   : > { %2141 = vmatprep.subr.bf16.mxu1 %v2974_v30 }
 0x344   : > { %v1196_v24 = vpack.c.bf16 %v3129_v6, %v3126_v4 }
 0x345   : > { %2098 = vmatmul.mubr.bf16.gmra.mxu1 %v1219_v59 }
 0x346   : > { %2149 = vmatpush3.bf16.msra.mxu1 %v2974_v30  ;;  %2101 = vmatprep.mubr.bf16.mxu1 %v1220_v61  ;;  %v3139_v30 = vadd.f32 %v2031_v40, %v3014_v29 }
 0x347   : > { %2142 = vmatprep.subr.bf16.mxu1 %v2977_v17 }
 0x34a   : > { %2150 = vmatpush3.bf16.msra.mxu1 %v2977_v17  ;;  %v1197_v17 = vpack.c.bf16 %v3142_v7, %v3139_v30 }
 0x34b   : > { %2143 = vmatprep.subr.bf16.mxu1 %v2982_v28 }
 0x34d   : > { %2102 = vmatmul.mubr.bf16.gmra.mxu1 %v1221_v5 }
 0x34e   : > { %2151 = vmatpush3.bf16.msra.mxu1 %v2982_v28  ;;  %2133 = vmatprep.mubr.bf16.mxu1 %v1196_v24 }
 0x34f   : > { %2144 = vmatprep.subr.bf16.mxu1 %v2985_v43 }
 0x352   : > { %2152 = vmatpush3.bf16.msra.mxu1 %v2985_v43 }
 0x355   : > { %2134 = vmatmul.mubr.bf16.vlgmr.msra.gmra.mxu1 %v1197_v17 }
 0x3d5   : > { %v2039_v8 = vpop.f32.mrf.mxu1 }
 0x3d6   : > { %v951_v9 = vsub.f32 %v2039_v8, %v2992_v13 }
 0x3d7   : > { %v934_v10 = vpop.f32.mrf.mxu1 }
 0x3d8   : > { %v949_v11 = vsub.f32 %v934_v10, %v2994_v14  ;;  %v955_v23 = vmul.f32 %v951_v9, %v2934_v48  ;;  %v1530_v10 = vsub.s32 4, %v2862_v35 }
 0x3d9   : > { %v2040_v45 = vpop.f32.mrf.mxu1 }
 0x3da   : > { %v953_v20 = vmul.f32 %v949_v11, %v2934_v48  ;;  %v952_v28 = vsub.f32 %v2040_v45, %v2999_v18  ;;  %v959_v46 = vadd.f32 %v2992_v13, %v955_v23 }
 0x3db   : > { %v937_v25 = vpop.f32.mrf.mxu1 }
 0x3dc   : > { %v956_v26 = vmul.f32 %v952_v28, %v2934_v48  ;;  %v950_v39 = vsub.f32 %v937_v25, %v3004_v21  ;;  %v957_v43 = vadd.f32 %v953_v20, %v2994_v14  ;;  %v3171_v61 = vadd.f32 %v3014_v29, %v959_v46 }
 0x3dd   : > { %v3215_v20 = vrot.slane %v2868_v37, %v1530_v10 }
 0x3de   : > { %v960_v40 = vadd.f32 %v2999_v18, %v956_v26  ;;  %v954_v27 = vmul.f32 %v950_v39, %v2934_v48  ;;  %v3165_v57 = vadd.f32 %v3014_v29, %v957_v43 }
 0x3e0   : > { %v958_v42 = vadd.f32 %v954_v27, %v3004_v21  ;;  %v3162_v47 = vadd.f32 %v3014_v29, %v960_v40 }
 0x3e2   : > { %v3168_v59 = vadd.f32 %v3014_v29, %v958_v42  ;;  %v1191_v48 = vpack.c.bf16 %v3162_v47, %v3171_v61 }
 0x3e4   : > { %v1190_v14 = vpack.c.bf16 %v3168_v59, %v3165_v57 }
 0x3e6   : > { %2121 = vmatprep.mubr.bf16.mxu0 %v1190_v14 }
 0x3e7   : > { %2122 = vmatmul.mubr.bf16.vlgmr.msra.gmra.mxu0 %v1191_v48 }
 0x3e8   : > { %2125 = vmatprep.mubr.bf16.mxu0 %v1192_v56 }
 0x3ef   : > { %2126 = vmatmul.mubr.bf16.gmra.mxu0 %v1193_v50 }
 0x3f0   : > { %2129 = vmatprep.mubr.bf16.mxu0 %v1194_v38 }
 0x3f5   : > { %v3186_v13 = vpop.f32.mrf.mxu1 }
 0x3f7   : > { %v3188_v18 = vpop.f32.mrf.mxu1  ;;  %2130 = vmatmul.mubr.bf16.gmra.mxu0 %v1195_v2 }
 0x3f9   : > { %v3193_v21 = vpop.f32.mrf.mxu1 }
 0x3fb   : > { %v3195_v29 = vpop.f32.mrf.mxu1 }
 0x3fd   : > { %v3197_v56 = vpop.f32.mrf.mxu1 }
 0x3ff   : > { %v3199_v54 = vpop.f32.mrf.mxu1 }
 0x401   : > { %v3201_v50 = vpop.f32.mrf.mxu1 }
 0x403   : > { %v3203_v5 = vpop.f32.mrf.mxu1 }
 0x405   : > { %v3205_v38 = vpop.f32.mrf.mxu1 }
 0x407   : > { %v3207_v24 = vpop.f32.mrf.mxu1 }
 0x409   : > { %v3209_v17 = vpop.f32.mrf.mxu1 }
 0x40b   : > { %v3211_v8 = vpop.f32.mrf.mxu1 }
 0x40d   : > { %v2103_v2 = vpop.f32.mrf.mxu1 }
 0x40f   : > { %v1368_v9 = vpop.f32.mrf.mxu1 }
 0x411   : > { %v2104_v11 = vpop.f32.mrf.mxu1 }
 0x413   : > { %v1371_v45 = vpop.f32.mrf.mxu1 }
 0x415   : > { %v2135_v28 = vpop.f32.mrf.mxu1 }
 0x416   : > { %v1522_v23 = vadd.f32 %v2135_v28, %v2103_v2 }
 0x417   : > { %v1513_v25 = vpop.f32.mrf.mxu1 }
 0x418   : > { %v1546_v26 = vadd.f32 %v3215_v20, %v1522_v23  ;;  %v1514_v39 = vadd.f32 %v1513_v25, %v1368_v9 }
 0x419   : > { %v2136_v43 = vpop.f32.mrf.mxu1 }
 0x41a   : > { %v1562_v40 = vsub.f32 0.0, %v1546_v26  ;;  %v1544_v27 = vadd.f32 %v3215_v20, %v1514_v39  ;;  %v1525_v46 = vadd.f32 %v2136_v43, %v2104_v11 }
 0x41b   : > { %v1516_v42 = vpop.f32.mrf.mxu1 }
 0x41c   : > { %v1592_v14 = vmul.f32 1.442695, %v1562_v40  ;;  %v1560_v48 = vsub.f32 0.0, %v1544_v27  ;;  %v1547_v35 = vadd.f32 %v3215_v20, %v1525_v46  ;;  %v1517_v3 = vadd.f32 %v1516_v42, %v1371_v45 }
 0x41d   : > { %v1656_v42 = vsub.f32 %v3126_v4, %v3106_v55 }
 0x41e   : > { %2345 = vpow2.f32 %v1592_v14  ;;  %v1588_v37 = vmul.f32 1.442695, %v1560_v48  ;;  %v1563_v10 = vsub.f32 0.0, %v1547_v35  ;;  %v1545_v2 = vadd.f32 %v3215_v20, %v1517_v3 }
 0x41f   : > { %v1658_v3 = vsub.f32 %v3139_v30, %v3119_v58  ;;  %v1659_v35 = vsub.f32 %v3142_v7, %v3122_v1 }
 0x420   : > { %2347 = vpow2.f32 %v1588_v37  ;;  %v1594_v28 = vmul.f32 1.442695, %v1563_v10  ;;  %v1561_v23 = vsub.f32 0.0, %v1545_v2 }
 0x422   : > { %2349 = vpow2.f32 %v1594_v28  ;;  %v1590_v9 = vmul.f32 1.442695, %v1561_v23  ;;  %v1657_v28 = vsub.f32 %v3129_v6, %v3109_v49 }
 0x424   : > { %2351 = vpow2.f32 %v1590_v9 }
 0x42b   : > { %v2346_v25 = vpop.eup %2345 }
 0x42c   : > { %v1610_v11 = vadd.f32 1.0, %v2346_v25 }
 0x42d   : > { %v2348_v26 = vpop.eup %2347 }
 0x42e   : > { %2353 = vrcp.f32 %v1610_v11  ;;  %v1608_v39 = vadd.f32 1.0, %v2348_v26 }
 0x42f   : > { %v2350_v43 = vpop.eup %2349 }
 0x430   : > { %2355 = vrcp.f32 %v1608_v39  ;;  %v1611_v45 = vadd.f32 1.0, %v2350_v43 }
 0x431   : > { %v2352_v40 = vpop.eup %2351 }
 0x432   : > { %2357 = vrcp.f32 %v1611_v45  ;;  %v1609_v27 = vadd.f32 1.0, %v2352_v40 }
 0x434   : > { %2359 = vrcp.f32 %v1609_v27 }
 0x43b   : > { %v2354_v46 = vpop.eup %2353 }
 0x43c   : > { %v1674_v14 = vmul.f32 %v2354_v46, %v1658_v3 }
 0x43d   : > { %v2356_v48 = vpop.eup %2355 }
 0x43e   : > { %v1690_v37 = vadd.f32 %v1674_v14, %v3119_v58  ;;  %v1672_v10 = vmul.f32 %v2356_v48, %v1656_v42 }
 0x43f   : > { %v2358_v2 = vpop.eup %2357 }
 0x440   : > { %1706 = vst [vmem:[%s3231_s12 + $0x70] sm:$0xff] %v1690_v37  ;;  %v1688_v4 = vadd.f32 %v1672_v10, %v3106_v55  ;;  %v1675_v30 = vmul.f32 %v2358_v2, %v1659_v35 }
 0x441   : > { %v2360_v23 = vpop.eup %2359 }
 0x442   : > { %1704 = vst [vmem:[%s3231_s12 + $0x60] sm:$0xff] %v1688_v4  ;;  %v1691_v7 = vadd.f32 %v1675_v30, %v3122_v1  ;;  %v1673_v58 = vmul.f32 %v2360_v23, %v1657_v28 }
 0x444   : > { %1707 = vst [vmem:[%s3231_s12 + $0x78] sm:$0xff] %v1691_v7  ;;  %v1689_v9 = vadd.f32 %v1673_v58, %v3109_v49 }
 0x446   : > { %1705 = vst [vmem:[%s3231_s12 + $0x68] sm:$0xff] %v1689_v9 }
 0x4a7   : > { %v2123_v6 = vpop.f32.mrf.mxu0 }
 0x4a8   : > { %v1474_v25 = vadd.f32 %v2123_v6, %v3186_v13 }
 0x4a9   : > { %v1465_v11 = vpop.f32.mrf.mxu0 }
 0x4aa   : > { %v1534_v26 = vadd.f32 %v3215_v20, %v1474_v25  ;;  %v1466_v39 = vadd.f32 %v1465_v11, %v3188_v18 }
 0x4ab   : > { %v2124_v43 = vpop.f32.mrf.mxu0 }
 0x4ac   : > { %v1550_v55 = vsub.f32 0.0, %v1534_v26  ;;  %v1532_v45 = vadd.f32 %v3215_v20, %v1466_v39  ;;  %v1477_v40 = vadd.f32 %v2124_v43, %v3193_v21 }
 0x4ad   : > { %v1468_v1 = vpop.f32.mrf.mxu0 }
 0x4ae   : > { %v1568_v27 = vmul.f32 1.442695, %v1550_v55  ;;  %v1548_v3 = vsub.f32 0.0, %v1532_v45  ;;  %v1535_v49 = vadd.f32 %v3215_v20, %v1477_v40  ;;  %v1469_v46 = vadd.f32 %v1468_v1, %v3195_v29 }
 0x4af   : > { %v2127_v42 = vpop.f32.mrf.mxu0 }
 0x4b0   : > { %2361 = vpow2.f32 %v1568_v27  ;;  %v1564_v13 = vmul.f32 1.442695, %v1548_v3  ;;  %v1551_v14 = vsub.f32 0.0, %v1535_v49  ;;  %v1533_v48 = vadd.f32 %v3215_v20, %v1469_v46 }
 0x4b1   : > { %v1490_v18 = vadd.f32 %v2127_v42, %v3197_v56  ;;  %v1481_v35 = vpop.f32.mrf.mxu0 }
 0x4b2   : > { %2363 = vpow2.f32 %v1564_v13  ;;  %v1570_v37 = vmul.f32 1.442695, %v1551_v14  ;;  %v1549_v10 = vsub.f32 0.0, %v1533_v48  ;;  %v1482_v21 = vadd.f32 %v1481_v35, %v3199_v54 }
 0x4b3   : > { %v1538_v2 = vadd.f32 %v3215_v20, %v1490_v18  ;;  %v2128_v28 = vpop.f32.mrf.mxu0 }
 0x4b4   : > { %2365 = vpow2.f32 %v1570_v37  ;;  %v1566_v4 = vmul.f32 1.442695, %v1549_v10  ;;  %v1536_v29 = vadd.f32 %v3215_v20, %v1482_v21  ;;  %v1493_v30 = vadd.f32 %v2128_v28, %v3201_v50 }
 0x4b5   : > { %v1554_v23 = vsub.f32 0.0, %v1538_v2  ;;  %v1484_v7 = vpop.f32.mrf.mxu0 }
 0x4b6   : > { %2367 = vpow2.f32 %v1566_v4  ;;  %v1552_v58 = vsub.f32 0.0, %v1536_v29  ;;  %v1539_v56 = vadd.f32 %v3215_v20, %v1493_v30  ;;  %v1485_v9 = vadd.f32 %v1484_v7, %v3203_v5 }
 0x4b7   : > { %v1576_v6 = vmul.f32 1.442695, %v1554_v23  ;;  %v2131_v25 = vpop.f32.mrf.mxu0 }
 0x4b8   : > { %v1572_v54 = vmul.f32 1.442695, %v1552_v58  ;;  %v1555_v11 = vsub.f32 0.0, %v1539_v56  ;;  %v1537_v26 = vadd.f32 %v3215_v20, %v1485_v9  ;;  %v1506_v39 = vadd.f32 %v2131_v25, %v3205_v38 }
 0x4b9   : > { %2369 = vpow2.f32 %v1576_v6  ;;  %v1497_v43 = vpop.f32.mrf.mxu0  ;;  %v1646_v25 = vsub.f32 %v3171_v61, %v3070_v22 }
 0x4ba   : > { %2371 = vpow2.f32 %v1572_v54  ;;  %v1578_v50 = vmul.f32 1.442695, %v1555_v11  ;;  %v1553_v55 = vsub.f32 0.0, %v1537_v26  ;;  %v1542_v45 = vadd.f32 %v3215_v20, %v1506_v39 }
 0x4bb   : > { %v1498_v40 = vadd.f32 %v1497_v43, %v3207_v24  ;;  %v2132_v1 = vpop.f32.mrf.mxu0  ;;  %v1644_v39 = vsub.f32 %v3165_v57, %v3023_v34 }
 0x4bc   : > { %2373 = vpow2.f32 %v1578_v50  ;;  %v1574_v5 = vmul.f32 1.442695, %v1553_v55  ;;  %v1558_v27 = vsub.f32 0.0, %v1542_v45  ;;  %v1509_v3 = vadd.f32 %v2132_v1, %v3209_v17 }
 0x4bd   : > { %v2362_v49 = vpop.eup %2361  ;;  %v1540_v46 = vadd.f32 %v3215_v20, %v1498_v40  ;;  %v1500_v42 = vpop.f32.mrf.mxu0  ;;  %v1647_v40 = vsub.f32 %v3162_v47, %v3066_v19 }
 0x4be   : > { %v1598_v38 = vadd.f32 1.0, %v2362_v49  ;;  %2375 = vpow2.f32 %v1574_v5  ;;  %v1584_v13 = vmul.f32 1.442695, %v1558_v27  ;;  %v1543_v14 = vadd.f32 %v3215_v20, %v1509_v3 }
 0x4bf   : > { %v2364_v48 = vpop.eup %2363  ;;  %v1556_v18 = vsub.f32 0.0, %v1540_v46  ;;  %v1501_v35 = vadd.f32 %v1500_v42, %v3211_v8  ;;  %v1645_v49 = vsub.f32 %v3168_v59, %v3017_v31 }
 0x4c0   : > { %2377 = vrcp.f32 %v1598_v38  ;;  %v1596_v24 = vadd.f32 1.0, %v2364_v48  ;;  %v1559_v37 = vsub.f32 0.0, %v1543_v14  ;;  %v1650_v14 = vsub.f32 %v3020_v33, %v3079_v15 }
 0x4c1   : > { %v2366_v10 = vpop.eup %2365  ;;  %2379 = vpow2.f32 %v1584_v13  ;;  %v1580_v21 = vmul.f32 1.442695, %v1556_v18  ;;  %v1541_v17 = vadd.f32 %v3215_v20, %v1501_v35 }
 0x4c2   : > { %2381 = vrcp.f32 %v1596_v24  ;;  %v1599_v2 = vadd.f32 1.0, %v2366_v10  ;;  %v1586_v28 = vmul.f32 1.442695, %v1559_v37 }
 0x4c3   : > { %v2368_v4 = vpop.eup %2367  ;;  %2383 = vpow2.f32 %v1580_v21  ;;  %v1557_v29 = vsub.f32 0.0, %v1541_v17 }
 0x4c4   : > { %2385 = vrcp.f32 %v1599_v2  ;;  %v1597_v30 = vadd.f32 1.0, %v2368_v4 }
 0x4c5   : > { %2387 = vpow2.f32 %v1586_v28  ;;  %v1582_v23 = vmul.f32 1.442695, %v1557_v29 }
 0x4c6   : > { %v2370_v7 = vpop.eup %2369  ;;  %2389 = vrcp.f32 %v1597_v30 }
 0x4c7   : > { %v2372_v8 = vpop.eup %2371  ;;  %v1602_v58 = vadd.f32 1.0, %v2370_v7  ;;  %2391 = vpow2.f32 %v1582_v23  ;;  %v3395_v7 = vld [vmem:[#allocation17_spill] sm:$0xff] }
 0x4c8   : > { %v1600_v56 = vadd.f32 1.0, %v2372_v8 }
 0x4c9   : > { %v2374_v9 = vpop.eup %2373  ;;  %2393 = vrcp.f32 %v1602_v58 }
 0x4ca   : > { %2395 = vrcp.f32 %v1600_v56  ;;  %v1603_v20 = vadd.f32 1.0, %v2374_v9 }
 0x4cb   : > { %v2376_v6 = vpop.eup %2375 }
 0x4cc   : > { %2397 = vrcp.f32 %v1603_v20  ;;  %v1601_v54 = vadd.f32 1.0, %v2376_v6 }
 0x4cd   : > { %v2378_v11 = vpop.eup %2377 }
 0x4ce   : > { %v2380_v26 = vpop.eup %2379  ;;  %v1662_v43 = vmul.f32 %v2378_v11, %v1646_v25  ;;  %2399 = vrcp.f32 %v1601_v54 }
 0x4cf   : > { %v2382_v50 = vpop.eup %2381  ;;  %v1606_v55 = vadd.f32 1.0, %v2380_v26 }
 0x4d0   : > { %v2384_v45 = vpop.eup %2383  ;;  %v1678_v1 = vadd.f32 %v1662_v43, %v3070_v22  ;;  %v1660_v61 = vmul.f32 %v2382_v50, %v1644_v39 }
 0x4d1   : > { %v2386_v5 = vpop.eup %2385  ;;  %2401 = vrcp.f32 %v1606_v55  ;;  %v1604_v27 = vadd.f32 1.0, %v2384_v45 }
 0x4d2   : > { %v2388_v3 = vpop.eup %2387  ;;  %1694 = vst [vmem:[%s3231_s12 + $0x10] sm:$0xff] %v1678_v1  ;;  %v1676_v57 = vadd.f32 %v1660_v61, %v3023_v34  ;;  %v1663_v46 = vmul.f32 %v2386_v5, %v1647_v40  ;;  %v1648_v34 = vsub.f32 %v3026_v41, %v3059_v12  ;;  %v1649_v41 = vsub.f32 %v3038_v51, %v3062_v16 }
 0x4d3   : > { %v2390_v42 = vpop.eup %2389  ;;  %2403 = vrcp.f32 %v1604_v27  ;;  %v1607_v38 = vadd.f32 1.0, %v2388_v3  ;;  %v1652_v51 = vsub.f32 %v3046_v63, %v3086_v62 }
 0x4d4   : > { %v2392_v47 = vpop.eup %2391  ;;  %1692 = vst [vmem:[%s3231_s12] sm:$0xff] %v1676_v57  ;;  %v1679_v22 = vadd.f32 %v1663_v46, %v3066_v19  ;;  %v1661_v13 = vmul.f32 %v2390_v42, %v1645_v49  ;;  %v1651_v19 = vsub.f32 %v3029_v44, %v3082_v32  ;;  %v1654_v44 = vsub.f32 %v3043_v60, %v3099_v52 }
 0x4d5   : > { %2405 = vrcp.f32 %v1607_v38  ;;  %v1605_v48 = vadd.f32 1.0, %v2392_v47 }
 0x4d6   : > { %v2394_v59 = vpop.eup %2393  ;;  %1695 = vst [vmem:[%s3231_s12 + $0x18] sm:$0xff] %v1679_v22  ;;  %v1677_v18 = vadd.f32 %v1661_v13, %v3017_v31 }
 0x4d7   : > { %v2396_v35 = vpop.eup %2395  ;;  %v1666_v24 = vmul.f32 %v2394_v59, %v1650_v14  ;;  %2407 = vrcp.f32 %v1605_v48 }
 0x4d8   : > { %1693 = vst [vmem:[%s3231_s12 + $0x8] sm:$0xff] %v1677_v18  ;;  %v1664_v33 = vmul.f32 %v2396_v35, %v1648_v34 }
 0x4d9   : > { %v2398_v37 = vpop.eup %2397  ;;  %v1682_v10 = vadd.f32 %v1666_v24, %v3079_v15 }
 0x4da   : > { %v1680_v21 = vadd.f32 %v1664_v33, %v3059_v12  ;;  %v1667_v17 = vmul.f32 %v2398_v37, %v1651_v19 }
 0x4db   : > { %v2400_v31 = vpop.eup %2399  ;;  %1698 = vst [vmem:[%s3231_s12 + $0x30] sm:$0xff] %v1682_v10 }
 0x4dc   : > { %1696 = vst [vmem:[%s3231_s12 + $0x20] sm:$0xff] %v1680_v21  ;;  %v1683_v2 = vadd.f32 %v1667_v17, %v3082_v32  ;;  %v1665_v28 = vmul.f32 %v2400_v31, %v1649_v41  ;;  %v1655_v32 = vsub.f32 %v3049_v0, %v3102_v53 }
 0x4de   : > { %v2402_v4 = vpop.eup %2401  ;;  %1699 = vst [vmem:[%s3231_s12 + $0x38] sm:$0xff] %v1683_v2  ;;  %v1681_v15 = vadd.f32 %v1665_v28, %v3062_v16  ;;  %v1653_v16 = vsub.f32 %v3395_v7, %v3089_v36 }
 0x4df   : > { %v1670_v12 = vmul.f32 %v2402_v4, %v1654_v44 }
 0x4e0   : > { %v2404_v29 = vpop.eup %2403  ;;  %1697 = vst [vmem:[%s3231_s12 + $0x28] sm:$0xff] %v1681_v15 }
 0x4e1   : > { %v1686_v30 = vadd.f32 %v1670_v12, %v3099_v52  ;;  %v1668_v60 = vmul.f32 %v2404_v29, %v1652_v51 }
 0x4e2   : > { %v2406_v23 = vpop.eup %2405 }
 0x4e3   : > { %1702 = vst [vmem:[%s3231_s12 + $0x50] sm:$0xff] %v1686_v30  ;;  %v1684_v8 = vadd.f32 %v1668_v60, %v3086_v62  ;;  %v1671_v63 = vmul.f32 %v2406_v23, %v1655_v32 }
 0x4e4   : > { %v2408_v58 = vpop.eup %2407 }
 0x4e5   : > { %1700 = vst [vmem:[%s3231_s12 + $0x40] sm:$0xff] %v1684_v8  ;;  %v1687_v0 = vadd.f32 %v1671_v63, %v3102_v53  ;;  %v1669_v56 = vmul.f32 %v2408_v58, %v1653_v16 }
 0x4e7   : > { %1703 = vst [vmem:[%s3231_s12 + $0x58] sm:$0xff] %v1687_v0  ;;  %v1685_v62 = vadd.f32 %v1669_v56, %v3089_v36 }
 0x4e9   : > { %1701 = vst [vmem:[%s3231_s12 + $0x48] sm:$0xff] %v1685_v62 }
 0x4ea   : > { %2554 = shalt.err (!%p2551_p7)
}
 0x4eb   : > { %s2555_s29 = scalar_lea.hbm %s3314_s30, 2048  ;;  %s2559_s16 = scalar_lea.hbm %s3368_s6, 4096 }
 0x4ec   : > { %p2556_p8 = scmp.ne.s32.totalorder %s3314_s30, %s2555_s29  ;;  %p2560_p12 = scmp.lt.s32.totalorder %s3314_s30, %s3368_s6 }
 0x4ed   : > { %p2561_p1 = scmp.lt.s32.totalorder %s2559_s16, %s2555_s29 }
 0x4ee   : > { %p2557_p2 = pnand %p2556_p8, %p3396_p6 }
 0x4ef   : > { %p2562_p9 = por %p2561_p1, %p2560_p12 }
 0x4f0   : > { %p2558_p11 = pneg %p2557_p2 }
 0x4f2   : > { %p2563_p13 = pnand %p2562_p9, %p2558_p11 }
 0x4f4   : > { %2566 = shalt.err (!%p2563_p13)
}
 0x4f5   : > { %s2630_s26 = smov 128   ;;  %s2631_s11 = smov 8  }
 0x4f6   : > { %2171 = dma.vmem_to_hbm [thread:$0]  (%p3396_p6), %s3316_s10, 2048, %s3314_s30, %s1709_s25, %s2630_s26, %s2630_s26, %s2631_s11  }
 0x4f7 PF: > { %s1737_s17 = sand.u32 1, %s2605_s21   ;;  %p3397_p4 = scmp.ne.s32.totalorder %s3377_s28, 0 }
 0x4f8   : > { %p3398_p0 = scmp.ge.s32.totalorder %s2617_s24, 2  ;;  %s1738_s9 = scalar_lea.sflag [#allocation4], %s1737_s17 }
 0x4fa   : > { %p2191_p3 = pnand %p3398_p0, %p3397_p4 }
 0x4fc   : > { %p2192_p5 = pneg %p2191_p3 }
 0x4fe   : > { %2600 = dma.done.wait (%p2192_p5), %s1738_s9, 2048  }
 0x4ff   : > { %2602 = vsyncadd (%p2192_p5), %s1738_s9, 4294965248  ;;  %p21_p10 = scmp.ge.s32.totalorder %s2761_s8, 4   ;;  %s3399_s21 = smov %s2609_s22 }
 0x500   : > { %s3400_s22 = smov %s2613_s23  ;;  %s3401_s23 = smov %s2777_s19 }
 0x501   : > { %s3402_s24 = smov %s2761_s8  ;;  %23 = sbr.rel (!%p21_p10) target bundleno = 7 (0x7), region = 106 }
 0x506   :  { %1743 = vsyncpa [#allocation3], 1 }
 0x507   :  { %1745 = vsyncpa [#allocation3 + $0x1], 1 }
 0x508   :  { %1746 = vsyncpa [#allocation6], 1 }
 0x509   :  { %1748 = vsyncpa [#allocation6 + $0x1], 1 }
 0x50a   :  { %1749 = vsyncpa [#allocation9], 1 }
 0x50b   :  { %1750 = vsyncpa [#allocation4], 1 }
 0x50c   :  { %1752 = vsyncpa [#allocation4 + $0x1], 1 }

</bundles_post_ra>
